<compile_context>
chip_gen: v5e
topology: v5e:2x2
jax: 0.10.0
libtpu: 0.0.40
codegen_flags: <defaults>
</compile_context>

<pallas_src>
import functools

import jax
import jax.numpy as jnp
from jax import lax
from jax.experimental import pallas as pl
from jax.experimental.pallas import tpu as pltpu


# ----------------------------- Pallas kernel ------------------------------ #
def lstm_bidir_kernel(x_ref, m_ref, wih_ref, b_ref, whh_ref,
                      out_ref, hn_ref, xg_ref, *, B):
    """Bidirectional LSTM over the full (small) sequence, fully VMEM-resident.

    x_ref   : [L*B, 2D] bf16  row block s = [ x[t=s] | x[t=L-1-s] ]
    m_ref   : [L*B, 2H] f32   row block s = [ mask[t=s]*1_H | mask[t=L-1-s]*1_H ]
    wih_ref : [2D, 8H]  bf16  fused, gate-permuted input weights (block struct)
    b_ref   : [1, 8H]   f32   bih + bhh, gate-permuted, both directions
    whh_ref : [2H, 8H]  bf16  block-diagonal recurrent weights
    out_ref : [B, L*H]  f32   output[b, t*H:(t+1)*H] = 0.5*(out_f+out_b)[b, t]
    hn_ref  : [B, H]    f32
    xg_ref  : [L*B, 8H] f32   VMEM scratch for the input projection

    Gate column layout (each block H wide):
        [ i_f  i_b  f_f  f_b  o_f  o_b  g_f  g_b ]
    """
    LB = x_ref.shape[0]
    L = LB // B
    H8 = whh_ref.shape[1]
    H = H8 // 8
    H2, H4, H6 = 2 * H, 4 * H, 6 * H

    # One fused MXU pass: input projection for both directions, all gates,
    # all time steps (time-pairing baked into the rows).  f32 accumulation.
    xg_ref[...] = jnp.dot(x_ref[...], wih_ref[...],
                          preferred_element_type=jnp.float32) + b_ref[...]

    whh = whh_ref[...]                         # [2H, 8H] bf16, loop-invariant

    hc = jnp.zeros((B, H2), jnp.float32)       # [ h_f | h_b ]
    cc = jnp.zeros((B, H2), jnp.float32)       # [ c_f | c_b ]

    # Merged forward/backward recurrence, fully unrolled (L is static).
    for s in range(L):
        tf, tb = s, L - 1 - s
        r0, r1 = s * B, (s + 1) * B

        # Single recurrent dot (block-diagonal weights) covering both dirs.
        pre = xg_ref[r0:r1, :] + jnp.dot(
            hc.astype(jnp.bfloat16), whh,
            preferred_element_type=jnp.float32)            # [B, 8H]

        # Stacked cell math: one sigmoid (6H), one tanh (2H), [B,2H] updates.
        sig = jax.nn.sigmoid(pre[:, 0:H6])
        g = jnp.tanh(pre[:, H6:H8])                         # [ g_f | g_b ]
        c_new = sig[:, H2:H4] * cc + sig[:, 0:H2] * g       # f*c + i*g
        h_new = sig[:, H4:H6] * jnp.tanh(c_new)             # o*tanh(c)

        # Packed-sequence emulation: freeze state where mask == 0.
        m_cat = m_ref[r0:r1, :] > 0.5                        # [B, 2H] bool
        hc = jnp.where(m_cat, h_new, hc)
        cc = jnp.where(m_cat, c_new, cc)

        # Per-step output contributions (0 at padded positions), stored now
        # (bounded live ranges).  Final output[t] = 0.5*(out_f[t]+out_b[t]).
        contrib = jnp.where(m_cat, hc, 0.0) * 0.5            # [B, 2H]
        of = contrib[:, 0:H]                                 # fwd out @ time tf
        ob = contrib[:, H:H2]                                # bwd out @ time tb
        f0, f1 = tf * H, (tf + 1) * H
        b0, b1 = tb * H, (tb + 1) * H
        if tf == tb:
            out_ref[:, f0:f1] = of + ob
        elif tf < tb:
            # First visit of both time indices: plain stores.
            out_ref[:, f0:f1] = of
            out_ref[:, b0:b1] = ob
        else:
            # Second visit: accumulate onto the other direction's term.
            out_ref[:, f0:f1] = out_ref[:, f0:f1] + of
            out_ref[:, b0:b1] = out_ref[:, b0:b1] + ob

    hn_ref[...] = (hc[:, 0:H] + hc[:, H:H2]) * 0.5


# ------------------------------- wrapper ---------------------------------- #
def _split4(w, H):
    """Split trailing 4H dim (torch gate order i,f,g,o) into H-wide blocks."""
    return {"i": w[..., 0:H], "f": w[..., H:2 * H],
            "g": w[..., 2 * H:3 * H], "o": w[..., 3 * H:4 * H]}


def rnn_model_forward(x, x_mask, params):
    """x: [B, L, D] float32, x_mask: [B, L] (0/1).  Returns (output [B,L,H], hn [B,H])."""
    B, L, D = x.shape
    H = params["whh_f"].shape[1]
    B_pad = ((B + 7) // 8) * 8                      # sublane-align the batch

    # --- pad batch, build time-major paired layouts (XLA-side, off-kernel) ---
    pad = B_pad - B
    xp = jnp.pad(x.astype(jnp.float32), ((0, pad), (0, 0), (0, 0)))
    mp = jnp.pad(x_mask.astype(jnp.float32), ((0, pad), (0, 0)))

    xt = jnp.transpose(xp, (1, 0, 2))                                 # [L, Bp, D]
    x_pair = jnp.concatenate([xt, xt[::-1]], axis=2)                  # [L, Bp, 2D]
    x_pair = x_pair.reshape(L * B_pad, 2 * D).astype(jnp.bfloat16)

    mt = jnp.broadcast_to(jnp.transpose(mp, (1, 0))[:, :, None],
                          (L, B_pad, H))                              # [L, Bp, H]
    m_pair = jnp.concatenate([mt, mt[::-1]], axis=2)                  # [L, Bp, 2H]
    m_pair = m_pair.reshape(L * B_pad, 2 * H)

    # --- fused, gate-permuted weights: layout [i_f i_b f_f f_b o_f o_b g_f g_b]
    wf = _split4(params["wih_f"].T, H)        # each [D, H]
    wb = _split4(params["wih_b"].T, H)
    zD = jnp.zeros((D, H), jnp.float32)
    wih_big = jnp.concatenate([
        jnp.concatenate([wf["i"], zD, wf["f"], zD, wf["o"], zD, wf["g"], zD], axis=1),
        jnp.concatenate([zD, wb["i"], zD, wb["f"], zD, wb["o"], zD, wb["g"]], axis=1),
    ], axis=0).astype(jnp.bfloat16)                                   # [2D, 8H]

    hf = _split4(params["whh_f"].T, H)        # each [H, H]
    hb = _split4(params["whh_b"].T, H)
    zH = jnp.zeros((H, H), jnp.float32)
    whh_big = jnp.concatenate([
        jnp.concatenate([hf["i"], zH, hf["f"], zH, hf["o"], zH, hf["g"], zH], axis=1),
        jnp.concatenate([zH, hb["i"], zH, hb["f"], zH, hb["o"], zH, hb["g"]], axis=1),
    ], axis=0).astype(jnp.bfloat16)                                   # [2H, 8H] block-diag

    bf = _split4((params["bih_f"] + params["bhh_f"])[None, :], H)     # each [1, H]
    bb = _split4((params["bih_b"] + params["bhh_b"])[None, :], H)
    b_big = jnp.concatenate([bf["i"], bb["i"], bf["f"], bb["f"],
                             bf["o"], bb["o"], bf["g"], bb["g"]], axis=1)   # [1, 8H]

    vmem = pl.BlockSpec(memory_space=pltpu.MemorySpace.VMEM)
    kernel = functools.partial(lstm_bidir_kernel, B=B_pad)
    out2d, hn_pad = pl.pallas_call(
        kernel,
        out_shape=(jax.ShapeDtypeStruct((B_pad, L * H), jnp.float32),
                   jax.ShapeDtypeStruct((B_pad, H), jnp.float32)),
        in_specs=[vmem] * 5,
        out_specs=(vmem, vmem),
        scratch_shapes=[pltpu.VMEM((L * B_pad, 8 * H), jnp.float32)],
    )(x_pair, m_pair, wih_big, b_big, whh_big)

    # Lane-dense slab -> [B, L, H] with a free trailing-dim reshape (no transpose).
    output = out2d[:B].reshape(B, L, H)
    hn = hn_pad[:B]
    return output, hn


# ------------------------- deterministic params ---------------------------- #
def init_lstm_params(key, input_size, hidden_size):
    """Same parameter shapes as torch.nn.LSTM(bidirectional=True, num_layers=1)."""
    k = 1.0 / jnp.sqrt(jnp.float32(hidden_size))
    names_shapes = [
        ("wih_f", (4 * hidden_size, input_size)),
        ("whh_f", (4 * hidden_size, hidden_size)),
        ("bih_f", (4 * hidden_size,)),
        ("bhh_f", (4 * hidden_size,)),
        ("wih_b", (4 * hidden_size, input_size)),
        ("whh_b", (4 * hidden_size, hidden_size)),
        ("bih_b", (4 * hidden_size,)),
        ("bhh_b", (4 * hidden_size,)),
    ]
    keys = jax.random.split(key, len(names_shapes))
    return {n: jax.random.uniform(kk, s, jnp.float32, -k, k)
            for kk, (n, s) in zip(keys, names_shapes)}


# ----------------------------- pure-JAX reference -------------------------- #
def reference_forward(x, x_mask, params):
    B, L, D = x.shape
    H = params["whh_f"].shape[1]
    mask = x_mask.astype(jnp.float32)

    def run_dir(wih, whh, bih, bhh, reverse):
        def cell(carry, inp):
            h, c = carry
            x_t, m_t = inp
            pre = x_t @ wih.T + bih + h @ whh.T + bhh
            i = jax.nn.sigmoid(pre[:, :H]); f = jax.nn.sigmoid(pre[:, H:2 * H])
            g = jnp.tanh(pre[:, 2 * H:3 * H]); o = jax.nn.sigmoid(pre[:, 3 * H:])
            c_new = f * c + i * g
            h_new = o * jnp.tanh(c_new)
            m = m_t[:, None]
            h = m * h_new + (1.0 - m) * h
            c = m * c_new + (1.0 - m) * c
            return (h, c), h * m

        xs = (jnp.transpose(x, (1, 0, 2)), mask.T)
        init = (jnp.zeros((B, H), jnp.float32), jnp.zeros((B, H), jnp.float32))
        (h_last, _), outs = lax.scan(cell, init, xs, reverse=reverse)
        return jnp.transpose(outs, (1, 0, 2)), h_last

    out_f, h_f = run_dir(params["wih_f"], params["whh_f"],
                         params["bih_f"], params["bhh_f"], reverse=False)
    out_b, h_b = run_dir(params["wih_b"], params["whh_b"],
                         params["bih_b"], params["bhh_b"], reverse=True)
    out = (out_f + out_b) * 0.5
    out = mask[:, :, None] * out
    hn = (h_f + h_b) * 0.5
    return out, hn


# --------------------------------- main ------------------------------------ #
if __name__ == "__main__":
    B, L, D, H = 2, 8, 32, 32     # batch, seq, input_size, hidden_size

    key = jax.random.PRNGKey(0)
    k_x, k_p = jax.random.split(key)
    x = jax.random.normal(k_x, (B, L, D), jnp.float32)

    lengths = jnp.array([L, 5], jnp.int32)                       # left-aligned mask
    x_mask = (jnp.arange(L)[None, :] < lengths[:, None]).astype(jnp.int32)

    params = init_lstm_params(k_p, D, H)

    fwd = jax.jit(functools.partial(rnn_model_forward, params=params))
    output, hn = fwd(x, x_mask)
    jax.block_until_ready((output, hn))

    # Sanity check against the pure-f32 JAX reference.  Tolerance loosened
    # (vs. 1e-4) because matmul operands are bf16 (f32 accumulation).
    ref_out, ref_hn = reference_forward(x, x_mask, params)
    assert output.shape == (B, L, H) and hn.shape == (B, H)
    assert jnp.allclose(output, ref_out, atol=5e-2, rtol=5e-2)
    assert jnp.allclose(hn, ref_hn, atol=5e-2, rtol=5e-2)

    print("KERNEL_OK")
</pallas_src>

<mosaic_0001>
module attributes {stable_mosaic.version = 11 : i64} {
  func.func @lstm_bidir_kernel(%arg0: memref<64x64xbf16, #tpu.memory_space<vmem>>, %arg1: memref<64x64xf32, #tpu.memory_space<vmem>>, %arg2: memref<64x256xbf16, #tpu.memory_space<vmem>>, %arg3: memref<1x256xf32, #tpu.memory_space<vmem>>, %arg4: memref<64x256xbf16, #tpu.memory_space<vmem>>, %arg5: memref<8x256xf32, #tpu.memory_space<vmem>>, %arg6: memref<8x32xf32, #tpu.memory_space<vmem>>, %arg7: memref<64x256xf32, #tpu.memory_space<vmem>>) attributes {dimension_semantics = [], scalar_prefetch = 0 : i64, scratch_operands = 1 : i64, tpu.core_type = #tpu.core_type<tc>} {
    %c0 = arith.constant 0 : index
    %c0_0 = arith.constant 0 : index
    %0 = vector.load %arg0[%c0, %c0_0] : memref<64x64xbf16, #tpu.memory_space<vmem>>, vector<64x64xbf16>
    %c0_1 = arith.constant 0 : index
    %c0_2 = arith.constant 0 : index
    %1 = vector.load %arg2[%c0_1, %c0_2] : memref<64x256xbf16, #tpu.memory_space<vmem>>, vector<64x256xbf16>
    %cst = arith.constant dense<0.000000e+00> : vector<64x256xf32>
    %2 = tpu.matmul %0, %1, %cst {dimension_numbers = #tpu.dot_dimension_numbers<[1], [0], [0], [1], [0, 0, 1, 1], [], []>} : vector<64x64xbf16>, vector<64x256xbf16>, vector<64x256xf32> -> vector<64x256xf32>
    %c0_3 = arith.constant 0 : index
    %c0_4 = arith.constant 0 : index
    %3 = vector.load %arg3[%c0_3, %c0_4] : memref<1x256xf32, #tpu.memory_space<vmem>>, vector<1x256xf32>
    %4 = vector.broadcast %3 : vector<1x256xf32> to vector<64x256xf32>
    %5 = arith.addf %2, %4 : vector<64x256xf32>
    %c0_5 = arith.constant 0 : index
    %c0_6 = arith.constant 0 : index
    %6 = vector.load %arg7[%c0_5, %c0_6] : memref<64x256xf32, #tpu.memory_space<vmem>>, vector<64x256xf32>
    tpu.vector_store %arg7[%c0_5, %c0_6], %5 {strides = array<i32>} : memref<64x256xf32, #tpu.memory_space<vmem>>, vector<64x256xf32>,
    %c0_7 = arith.constant 0 : index
    %c0_8 = arith.constant 0 : index
    %7 = vector.load %arg4[%c0_7, %c0_8] : memref<64x256xbf16, #tpu.memory_space<vmem>>, vector<64x256xbf16>
    %cst_9 = arith.constant 0.000000e+00 : f32
    %8 = vector.broadcast %cst_9 : f32 to vector<8x64xf32>
    %cst_10 = arith.constant 0.000000e+00 : f32
    %9 = vector.broadcast %cst_10 : f32 to vector<8x64xf32>
    %c0_11 = arith.constant 0 : index
    %c0_12 = arith.constant 0 : index
    %10 = vector.load %arg7[%c0_11, %c0_12] : memref<64x256xf32, #tpu.memory_space<vmem>>, vector<8x256xf32>
    %11 = arith.truncf %8 : vector<8x64xf32> to vector<8x64xbf16>
    %cst_13 = arith.constant dense<0.000000e+00> : vector<8x256xf32>
    %12 = tpu.matmul %11, %7, %cst_13 {dimension_numbers = #tpu.dot_dimension_numbers<[1], [0], [0], [1], [0, 0, 1, 1], [], []>} : vector<8x64xbf16>, vector<64x256xbf16>, vector<8x256xf32> -> vector<8x256xf32>
    %13 = arith.addf %10, %12 : vector<8x256xf32>
    %14 = vector.extract_strided_slice %13 {offsets = [0, 0], sizes = [8, 192], strides = [1, 1]} : vector<8x256xf32> to vector<8x192xf32>
    %15 = arith.negf %14 : vector<8x192xf32>
    %16 = math.exp %15 : vector<8x192xf32>
    %cst_14 = arith.constant 1.000000e+00 : f32
    %17 = vector.broadcast %cst_14 : f32 to vector<8x192xf32>
    %18 = arith.addf %17, %16 : vector<8x192xf32>
    %19 = arith.divf %17, %18 : vector<8x192xf32>
    %20 = vector.extract_strided_slice %13 {offsets = [0, 192], sizes = [8, 64], strides = [1, 1]} : vector<8x256xf32> to vector<8x64xf32>
    %21 = math.tanh %20 : vector<8x64xf32>
    %22 = vector.extract_strided_slice %19 {offsets = [0, 64], sizes = [8, 64], strides = [1, 1]} : vector<8x192xf32> to vector<8x64xf32>
    %23 = arith.mulf %22, %9 : vector<8x64xf32>
    %24 = vector.extract_strided_slice %19 {offsets = [0, 0], sizes = [8, 64], strides = [1, 1]} : vector<8x192xf32> to vector<8x64xf32>
    %25 = arith.mulf %24, %21 : vector<8x64xf32>
    %26 = arith.addf %23, %25 : vector<8x64xf32>
    %27 = vector.extract_strided_slice %19 {offsets = [0, 128], sizes = [8, 64], strides = [1, 1]} : vector<8x192xf32> to vector<8x64xf32>
    %28 = math.tanh %26 : vector<8x64xf32>
    %29 = arith.mulf %27, %28 : vector<8x64xf32>
    %c0_15 = arith.constant 0 : index
    %c0_16 = arith.constant 0 : index
    %30 = vector.load %arg1[%c0_15, %c0_16] : memref<64x64xf32, #tpu.memory_space<vmem>>, vector<8x64xf32>
    %cst_17 = arith.constant 5.000000e-01 : f32
    %31 = vector.broadcast %cst_17 : f32 to vector<8x64xf32>
    %32 = arith.cmpf ogt, %30, %31 : vector<8x64xf32>
    %33 = arith.select %32, %29, %8 : vector<8x64xi1>, vector<8x64xf32>
    %34 = arith.select %32, %26, %9 : vector<8x64xi1>, vector<8x64xf32>
    %cst_18 = arith.constant 0.000000e+00 : f32
    %35 = vector.broadcast %cst_18 : f32 to vector<8x64xf32>
    %36 = arith.select %32, %33, %35 : vector<8x64xi1>, vector<8x64xf32>
    %cst_19 = arith.constant 5.000000e-01 : f32
    %37 = vector.broadcast %cst_19 : f32 to vector<8x64xf32>
    %38 = arith.mulf %36, %37 : vector<8x64xf32>
    %39 = vector.extract_strided_slice %38 {offsets = [0, 0], sizes = [8, 32], strides = [1, 1]} : vector<8x64xf32> to vector<8x32xf32>
    %40 = vector.extract_strided_slice %38 {offsets = [0, 32], sizes = [8, 32], strides = [1, 1]} : vector<8x64xf32> to vector<8x32xf32>
    %c0_20 = arith.constant 0 : index
    %c0_21 = arith.constant 0 : index
    %41 = vector.load %arg5[%c0_20, %c0_21] : memref<8x256xf32, #tpu.memory_space<vmem>>, vector<8x32xf32>
    tpu.vector_store %arg5[%c0_20, %c0_21], %39 {strides = array<i32>} : memref<8x256xf32, #tpu.memory_space<vmem>>, vector<8x32xf32>,
    %c0_22 = arith.constant 0 : index
    %c224 = arith.constant 224 : index
    %42 = vector.load %arg5[%c0_22, %c224] : memref<8x256xf32, #tpu.memory_space<vmem>>, vector<8x32xf32>
    tpu.vector_store %arg5[%c0_22, %c224], %40 {strides = array<i32>} : memref<8x256xf32, #tpu.memory_space<vmem>>, vector<8x32xf32>,
    %c8 = arith.constant 8 : index
    %c0_23 = arith.constant 0 : index
    %43 = vector.load %arg7[%c8, %c0_23] : memref<64x256xf32, #tpu.memory_space<vmem>>, vector<8x256xf32>
    %44 = arith.truncf %33 : vector<8x64xf32> to vector<8x64xbf16>
    %cst_24 = arith.constant dense<0.000000e+00> : vector<8x256xf32>
    %45 = tpu.matmul %44, %7, %cst_24 {dimension_numbers = #tpu.dot_dimension_numbers<[1], [0], [0], [1], [0, 0, 1, 1], [], []>} : vector<8x64xbf16>, vector<64x256xbf16>, vector<8x256xf32> -> vector<8x256xf32>
    %46 = arith.addf %43, %45 : vector<8x256xf32>
    %47 = vector.extract_strided_slice %46 {offsets = [0, 0], sizes = [8, 192], strides = [1, 1]} : vector<8x256xf32> to vector<8x192xf32>
    %48 = arith.negf %47 : vector<8x192xf32>
    %49 = math.exp %48 : vector<8x192xf32>
    %cst_25 = arith.constant 1.000000e+00 : f32
    %50 = vector.broadcast %cst_25 : f32 to vector<8x192xf32>
    %51 = arith.addf %50, %49 : vector<8x192xf32>
    %52 = arith.divf %50, %51 : vector<8x192xf32>
    %53 = vector.extract_strided_slice %46 {offsets = [0, 192], sizes = [8, 64], strides = [1, 1]} : vector<8x256xf32> to vector<8x64xf32>
    %54 = math.tanh %53 : vector<8x64xf32>
    %55 = vector.extract_strided_slice %52 {offsets = [0, 64], sizes = [8, 64], strides = [1, 1]} : vector<8x192xf32> to vector<8x64xf32>
    %56 = arith.mulf %55, %34 : vector<8x64xf32>
    %57 = vector.extract_strided_slice %52 {offsets = [0, 0], sizes = [8, 64], strides = [1, 1]} : vector<8x192xf32> to vector<8x64xf32>
    %58 = arith.mulf %57, %54 : vector<8x64xf32>
    %59 = arith.addf %56, %58 : vector<8x64xf32>
    %60 = vector.extract_strided_slice %52 {offsets = [0, 128], sizes = [8, 64], strides = [1, 1]} : vector<8x192xf32> to vector<8x64xf32>
    %61 = math.tanh %59 : vector<8x64xf32>
    %62 = arith.mulf %60, %61 : vector<8x64xf32>
    %c8_26 = arith.constant 8 : index
    %c0_27 = arith.constant 0 : index
    %63 = vector.load %arg1[%c8_26, %c0_27] : memref<64x64xf32, #tpu.memory_space<vmem>>, vector<8x64xf32>
    %cst_28 = arith.constant 5.000000e-01 : f32
    %64 = vector.broadcast %cst_28 : f32 to vector<8x64xf32>
    %65 = arith.cmpf ogt, %63, %64 : vector<8x64xf32>
    %66 = arith.select %65, %62, %33 : vector<8x64xi1>, vector<8x64xf32>
    %67 = arith.select %65, %59, %34 : vector<8x64xi1>, vector<8x64xf32>
    %cst_29 = arith.constant 0.000000e+00 : f32
    %68 = vector.broadcast %cst_29 : f32 to vector<8x64xf32>
    %69 = arith.select %65, %66, %68 : vector<8x64xi1>, vector<8x64xf32>
    %cst_30 = arith.constant 5.000000e-01 : f32
    %70 = vector.broadcast %cst_30 : f32 to vector<8x64xf32>
    %71 = arith.mulf %69, %70 : vector<8x64xf32>
    %72 = vector.extract_strided_slice %71 {offsets = [0, 0], sizes = [8, 32], strides = [1, 1]} : vector<8x64xf32> to vector<8x32xf32>
    %73 = vector.extract_strided_slice %71 {offsets = [0, 32], sizes = [8, 32], strides = [1, 1]} : vector<8x64xf32> to vector<8x32xf32>
    %c0_31 = arith.constant 0 : index
    %c32 = arith.constant 32 : index
    %74 = vector.load %arg5[%c0_31, %c32] : memref<8x256xf32, #tpu.memory_space<vmem>>, vector<8x32xf32>
    tpu.vector_store %arg5[%c0_31, %c32], %72 {strides = array<i32>} : memref<8x256xf32, #tpu.memory_space<vmem>>, vector<8x32xf32>,
    %c0_32 = arith.constant 0 : index
    %c192 = arith.constant 192 : index
    %75 = vector.load %arg5[%c0_32, %c192] : memref<8x256xf32, #tpu.memory_space<vmem>>, vector<8x32xf32>
    tpu.vector_store %arg5[%c0_32, %c192], %73 {strides = array<i32>} : memref<8x256xf32, #tpu.memory_space<vmem>>, vector<8x32xf32>,
    %c16 = arith.constant 16 : index
    %c0_33 = arith.constant 0 : index
    %76 = vector.load %arg7[%c16, %c0_33] : memref<64x256xf32, #tpu.memory_space<vmem>>, vector<8x256xf32>
    %77 = arith.truncf %66 : vector<8x64xf32> to vector<8x64xbf16>
    %cst_34 = arith.constant dense<0.000000e+00> : vector<8x256xf32>
    %78 = tpu.matmul %77, %7, %cst_34 {dimension_numbers = #tpu.dot_dimension_numbers<[1], [0], [0], [1], [0, 0, 1, 1], [], []>} : vector<8x64xbf16>, vector<64x256xbf16>, vector<8x256xf32> -> vector<8x256xf32>
    %79 = arith.addf %76, %78 : vector<8x256xf32>
    %80 = vector.extract_strided_slice %79 {offsets = [0, 0], sizes = [8, 192], strides = [1, 1]} : vector<8x256xf32> to vector<8x192xf32>
    %81 = arith.negf %80 : vector<8x192xf32>
    %82 = math.exp %81 : vector<8x192xf32>
    %cst_35 = arith.constant 1.000000e+00 : f32
    %83 = vector.broadcast %cst_35 : f32 to vector<8x192xf32>
    %84 = arith.addf %83, %82 : vector<8x192xf32>
    %85 = arith.divf %83, %84 : vector<8x192xf32>
    %86 = vector.extract_strided_slice %79 {offsets = [0, 192], sizes = [8, 64], strides = [1, 1]} : vector<8x256xf32> to vector<8x64xf32>
    %87 = math.tanh %86 : vector<8x64xf32>
    %88 = vector.extract_strided_slice %85 {offsets = [0, 64], sizes = [8, 64], strides = [1, 1]} : vector<8x192xf32> to vector<8x64xf32>
    %89 = arith.mulf %88, %67 : vector<8x64xf32>
    %90 = vector.extract_strided_slice %85 {offsets = [0, 0], sizes = [8, 64], strides = [1, 1]} : vector<8x192xf32> to vector<8x64xf32>
    %91 = arith.mulf %90, %87 : vector<8x64xf32>
    %92 = arith.addf %89, %91 : vector<8x64xf32>
    %93 = vector.extract_strided_slice %85 {offsets = [0, 128], sizes = [8, 64], strides = [1, 1]} : vector<8x192xf32> to vector<8x64xf32>
    %94 = math.tanh %92 : vector<8x64xf32>
    %95 = arith.mulf %93, %94 : vector<8x64xf32>
    %c16_36 = arith.constant 16 : index
    %c0_37 = arith.constant 0 : index
    %96 = vector.load %arg1[%c16_36, %c0_37] : memref<64x64xf32, #tpu.memory_space<vmem>>, vector<8x64xf32>
    %cst_38 = arith.constant 5.000000e-01 : f32
    %97 = vector.broadcast %cst_38 : f32 to vector<8x64xf32>
    %98 = arith.cmpf ogt, %96, %97 : vector<8x64xf32>
    %99 = arith.select %98, %95, %66 : vector<8x64xi1>, vector<8x64xf32>
    %100 = arith.select %98, %92, %67 : vector<8x64xi1>, vector<8x64xf32>
    %cst_39 = arith.constant 0.000000e+00 : f32
    %101 = vector.broadcast %cst_39 : f32 to vector<8x64xf32>
    %102 = arith.select %98, %99, %101 : vector<8x64xi1>, vector<8x64xf32>
    %cst_40 = arith.constant 5.000000e-01 : f32
    %103 = vector.broadcast %cst_40 : f32 to vector<8x64xf32>
    %104 = arith.mulf %102, %103 : vector<8x64xf32>
    %105 = vector.extract_strided_slice %104 {offsets = [0, 0], sizes = [8, 32], strides = [1, 1]} : vector<8x64xf32> to vector<8x32xf32>
    %106 = vector.extract_strided_slice %104 {offsets = [0, 32], sizes = [8, 32], strides = [1, 1]} : vector<8x64xf32> to vector<8x32xf32>
    %c0_41 = arith.constant 0 : index
    %c64 = arith.constant 64 : index
    %107 = vector.load %arg5[%c0_41, %c64] : memref<8x256xf32, #tpu.memory_space<vmem>>, vector<8x32xf32>
    tpu.vector_store %arg5[%c0_41, %c64], %105 {strides = array<i32>} : memref<8x256xf32, #tpu.memory_space<vmem>>, vector<8x32xf32>,
    %c0_42 = arith.constant 0 : index
    %c160 = arith.constant 160 : index
    %108 = vector.load %arg5[%c0_42, %c160] : memref<8x256xf32, #tpu.memory_space<vmem>>, vector<8x32xf32>
    tpu.vector_store %arg5[%c0_42, %c160], %106 {strides = array<i32>} : memref<8x256xf32, #tpu.memory_space<vmem>>, vector<8x32xf32>,
    %c24 = arith.constant 24 : index
    %c0_43 = arith.constant 0 : index
    %109 = vector.load %arg7[%c24, %c0_43] : memref<64x256xf32, #tpu.memory_space<vmem>>, vector<8x256xf32>
    %110 = arith.truncf %99 : vector<8x64xf32> to vector<8x64xbf16>
    %cst_44 = arith.constant dense<0.000000e+00> : vector<8x256xf32>
    %111 = tpu.matmul %110, %7, %cst_44 {dimension_numbers = #tpu.dot_dimension_numbers<[1], [0], [0], [1], [0, 0, 1, 1], [], []>} : vector<8x64xbf16>, vector<64x256xbf16>, vector<8x256xf32> -> vector<8x256xf32>
    %112 = arith.addf %109, %111 : vector<8x256xf32>
    %113 = vector.extract_strided_slice %112 {offsets = [0, 0], sizes = [8, 192], strides = [1, 1]} : vector<8x256xf32> to vector<8x192xf32>
    %114 = arith.negf %113 : vector<8x192xf32>
    %115 = math.exp %114 : vector<8x192xf32>
    %cst_45 = arith.constant 1.000000e+00 : f32
    %116 = vector.broadcast %cst_45 : f32 to vector<8x192xf32>
    %117 = arith.addf %116, %115 : vector<8x192xf32>
    %118 = arith.divf %116, %117 : vector<8x192xf32>
    %119 = vector.extract_strided_slice %112 {offsets = [0, 192], sizes = [8, 64], strides = [1, 1]} : vector<8x256xf32> to vector<8x64xf32>
    %120 = math.tanh %119 : vector<8x64xf32>
    %121 = vector.extract_strided_slice %118 {offsets = [0, 64], sizes = [8, 64], strides = [1, 1]} : vector<8x192xf32> to vector<8x64xf32>
    %122 = arith.mulf %121, %100 : vector<8x64xf32>
    %123 = vector.extract_strided_slice %118 {offsets = [0, 0], sizes = [8, 64], strides = [1, 1]} : vector<8x192xf32> to vector<8x64xf32>
    %124 = arith.mulf %123, %120 : vector<8x64xf32>
    %125 = arith.addf %122, %124 : vector<8x64xf32>
    %126 = vector.extract_strided_slice %118 {offsets = [0, 128], sizes = [8, 64], strides = [1, 1]} : vector<8x192xf32> to vector<8x64xf32>
    %127 = math.tanh %125 : vector<8x64xf32>
    %128 = arith.mulf %126, %127 : vector<8x64xf32>
    %c24_46 = arith.constant 24 : index
    %c0_47 = arith.constant 0 : index
    %129 = vector.load %arg1[%c24_46, %c0_47] : memref<64x64xf32, #tpu.memory_space<vmem>>, vector<8x64xf32>
    %cst_48 = arith.constant 5.000000e-01 : f32
    %130 = vector.broadcast %cst_48 : f32 to vector<8x64xf32>
    %131 = arith.cmpf ogt, %129, %130 : vector<8x64xf32>
    %132 = arith.select %131, %128, %99 : vector<8x64xi1>, vector<8x64xf32>
    %133 = arith.select %131, %125, %100 : vector<8x64xi1>, vector<8x64xf32>
    %cst_49 = arith.constant 0.000000e+00 : f32
    %134 = vector.broadcast %cst_49 : f32 to vector<8x64xf32>
    %135 = arith.select %131, %132, %134 : vector<8x64xi1>, vector<8x64xf32>
    %cst_50 = arith.constant 5.000000e-01 : f32
    %136 = vector.broadcast %cst_50 : f32 to vector<8x64xf32>
    %137 = arith.mulf %135, %136 : vector<8x64xf32>
    %138 = vector.extract_strided_slice %137 {offsets = [0, 0], sizes = [8, 32], strides = [1, 1]} : vector<8x64xf32> to vector<8x32xf32>
    %139 = vector.extract_strided_slice %137 {offsets = [0, 32], sizes = [8, 32], strides = [1, 1]} : vector<8x64xf32> to vector<8x32xf32>
    %c0_51 = arith.constant 0 : index
    %c96 = arith.constant 96 : index
    %140 = vector.load %arg5[%c0_51, %c96] : memref<8x256xf32, #tpu.memory_space<vmem>>, vector<8x32xf32>
    tpu.vector_store %arg5[%c0_51, %c96], %138 {strides = array<i32>} : memref<8x256xf32, #tpu.memory_space<vmem>>, vector<8x32xf32>,
    %c0_52 = arith.constant 0 : index
    %c128 = arith.constant 128 : index
    %141 = vector.load %arg5[%c0_52, %c128] : memref<8x256xf32, #tpu.memory_space<vmem>>, vector<8x32xf32>
    tpu.vector_store %arg5[%c0_52, %c128], %139 {strides = array<i32>} : memref<8x256xf32, #tpu.memory_space<vmem>>, vector<8x32xf32>,
    %c32_53 = arith.constant 32 : index
    %c0_54 = arith.constant 0 : index
    %142 = vector.load %arg7[%c32_53, %c0_54] : memref<64x256xf32, #tpu.memory_space<vmem>>, vector<8x256xf32>
    %143 = arith.truncf %132 : vector<8x64xf32> to vector<8x64xbf16>
    %cst_55 = arith.constant dense<0.000000e+00> : vector<8x256xf32>
    %144 = tpu.matmul %143, %7, %cst_55 {dimension_numbers = #tpu.dot_dimension_numbers<[1], [0], [0], [1], [0, 0, 1, 1], [], []>} : vector<8x64xbf16>, vector<64x256xbf16>, vector<8x256xf32> -> vector<8x256xf32>
    %145 = arith.addf %142, %144 : vector<8x256xf32>
    %146 = vector.extract_strided_slice %145 {offsets = [0, 0], sizes = [8, 192], strides = [1, 1]} : vector<8x256xf32> to vector<8x192xf32>
    %147 = arith.negf %146 : vector<8x192xf32>
    %148 = math.exp %147 : vector<8x192xf32>
    %cst_56 = arith.constant 1.000000e+00 : f32
    %149 = vector.broadcast %cst_56 : f32 to vector<8x192xf32>
    %150 = arith.addf %149, %148 : vector<8x192xf32>
    %151 = arith.divf %149, %150 : vector<8x192xf32>
    %152 = vector.extract_strided_slice %145 {offsets = [0, 192], sizes = [8, 64], strides = [1, 1]} : vector<8x256xf32> to vector<8x64xf32>
    %153 = math.tanh %152 : vector<8x64xf32>
    %154 = vector.extract_strided_slice %151 {offsets = [0, 64], sizes = [8, 64], strides = [1, 1]} : vector<8x192xf32> to vector<8x64xf32>
    %155 = arith.mulf %154, %133 : vector<8x64xf32>
    %156 = vector.extract_strided_slice %151 {offsets = [0, 0], sizes = [8, 64], strides = [1, 1]} : vector<8x192xf32> to vector<8x64xf32>
    %157 = arith.mulf %156, %153 : vector<8x64xf32>
    %158 = arith.addf %155, %157 : vector<8x64xf32>
    %159 = vector.extract_strided_slice %151 {offsets = [0, 128], sizes = [8, 64], strides = [1, 1]} : vector<8x192xf32> to vector<8x64xf32>
    %160 = math.tanh %158 : vector<8x64xf32>
    %161 = arith.mulf %159, %160 : vector<8x64xf32>
    %c32_57 = arith.constant 32 : index
    %c0_58 = arith.constant 0 : index
    %162 = vector.load %arg1[%c32_57, %c0_58] : memref<64x64xf32, #tpu.memory_space<vmem>>, vector<8x64xf32>
    %cst_59 = arith.constant 5.000000e-01 : f32
    %163 = vector.broadcast %cst_59 : f32 to vector<8x64xf32>
    %164 = arith.cmpf ogt, %162, %163 : vector<8x64xf32>
    %165 = arith.select %164, %161, %132 : vector<8x64xi1>, vector<8x64xf32>
    %166 = arith.select %164, %158, %133 : vector<8x64xi1>, vector<8x64xf32>
    %cst_60 = arith.constant 0.000000e+00 : f32
    %167 = vector.broadcast %cst_60 : f32 to vector<8x64xf32>
    %168 = arith.select %164, %165, %167 : vector<8x64xi1>, vector<8x64xf32>
    %cst_61 = arith.constant 5.000000e-01 : f32
    %169 = vector.broadcast %cst_61 : f32 to vector<8x64xf32>
    %170 = arith.mulf %168, %169 : vector<8x64xf32>
    %171 = vector.extract_strided_slice %170 {offsets = [0, 0], sizes = [8, 32], strides = [1, 1]} : vector<8x64xf32> to vector<8x32xf32>
    %172 = vector.extract_strided_slice %170 {offsets = [0, 32], sizes = [8, 32], strides = [1, 1]} : vector<8x64xf32> to vector<8x32xf32>
    %c0_62 = arith.constant 0 : index
    %c128_63 = arith.constant 128 : index
    %173 = vector.load %arg5[%c0_62, %c128_63] : memref<8x256xf32, #tpu.memory_space<vmem>>, vector<8x32xf32>
    %174 = arith.addf %173, %171 : vector<8x32xf32>
    %c0_64 = arith.constant 0 : index
    %c128_65 = arith.constant 128 : index
    %175 = vector.load %arg5[%c0_64, %c128_65] : memref<8x256xf32, #tpu.memory_space<vmem>>, vector<8x32xf32>
    tpu.vector_store %arg5[%c0_64, %c128_65], %174 {strides = array<i32>} : memref<8x256xf32, #tpu.memory_space<vmem>>, vector<8x32xf32>,
    %c0_66 = arith.constant 0 : index
    %c96_67 = arith.constant 96 : index
    %176 = vector.load %arg5[%c0_66, %c96_67] : memref<8x256xf32, #tpu.memory_space<vmem>>, vector<8x32xf32>
    %177 = arith.addf %176, %172 : vector<8x32xf32>
    %c0_68 = arith.constant 0 : index
    %c96_69 = arith.constant 96 : index
    %178 = vector.load %arg5[%c0_68, %c96_69] : memref<8x256xf32, #tpu.memory_space<vmem>>, vector<8x32xf32>
    tpu.vector_store %arg5[%c0_68, %c96_69], %177 {strides = array<i32>} : memref<8x256xf32, #tpu.memory_space<vmem>>, vector<8x32xf32>,
    %c40 = arith.constant 40 : index
    %c0_70 = arith.constant 0 : index
    %179 = vector.load %arg7[%c40, %c0_70] : memref<64x256xf32, #tpu.memory_space<vmem>>, vector<8x256xf32>
    %180 = arith.truncf %165 : vector<8x64xf32> to vector<8x64xbf16>
    %cst_71 = arith.constant dense<0.000000e+00> : vector<8x256xf32>
    %181 = tpu.matmul %180, %7, %cst_71 {dimension_numbers = #tpu.dot_dimension_numbers<[1], [0], [0], [1], [0, 0, 1, 1], [], []>} : vector<8x64xbf16>, vector<64x256xbf16>, vector<8x256xf32> -> vector<8x256xf32>
    %182 = arith.addf %179, %181 : vector<8x256xf32>
    %183 = vector.extract_strided_slice %182 {offsets = [0, 0], sizes = [8, 192], strides = [1, 1]} : vector<8x256xf32> to vector<8x192xf32>
    %184 = arith.negf %183 : vector<8x192xf32>
    %185 = math.exp %184 : vector<8x192xf32>
    %cst_72 = arith.constant 1.000000e+00 : f32
    %186 = vector.broadcast %cst_72 : f32 to vector<8x192xf32>
    %187 = arith.addf %186, %185 : vector<8x192xf32>
    %188 = arith.divf %186, %187 : vector<8x192xf32>
    %189 = vector.extract_strided_slice %182 {offsets = [0, 192], sizes = [8, 64], strides = [1, 1]} : vector<8x256xf32> to vector<8x64xf32>
    %190 = math.tanh %189 : vector<8x64xf32>
    %191 = vector.extract_strided_slice %188 {offsets = [0, 64], sizes = [8, 64], strides = [1, 1]} : vector<8x192xf32> to vector<8x64xf32>
    %192 = arith.mulf %191, %166 : vector<8x64xf32>
    %193 = vector.extract_strided_slice %188 {offsets = [0, 0], sizes = [8, 64], strides = [1, 1]} : vector<8x192xf32> to vector<8x64xf32>
    %194 = arith.mulf %193, %190 : vector<8x64xf32>
    %195 = arith.addf %192, %194 : vector<8x64xf32>
    %196 = vector.extract_strided_slice %188 {offsets = [0, 128], sizes = [8, 64], strides = [1, 1]} : vector<8x192xf32> to vector<8x64xf32>
    %197 = math.tanh %195 : vector<8x64xf32>
    %198 = arith.mulf %196, %197 : vector<8x64xf32>
    %c40_73 = arith.constant 40 : index
    %c0_74 = arith.constant 0 : index
    %199 = vector.load %arg1[%c40_73, %c0_74] : memref<64x64xf32, #tpu.memory_space<vmem>>, vector<8x64xf32>
    %cst_75 = arith.constant 5.000000e-01 : f32
    %200 = vector.broadcast %cst_75 : f32 to vector<8x64xf32>
    %201 = arith.cmpf ogt, %199, %200 : vector<8x64xf32>
    %202 = arith.select %201, %198, %165 : vector<8x64xi1>, vector<8x64xf32>
    %203 = arith.select %201, %195, %166 : vector<8x64xi1>, vector<8x64xf32>
    %cst_76 = arith.constant 0.000000e+00 : f32
    %204 = vector.broadcast %cst_76 : f32 to vector<8x64xf32>
    %205 = arith.select %201, %202, %204 : vector<8x64xi1>, vector<8x64xf32>
    %cst_77 = arith.constant 5.000000e-01 : f32
    %206 = vector.broadcast %cst_77 : f32 to vector<8x64xf32>
    %207 = arith.mulf %205, %206 : vector<8x64xf32>
    %208 = vector.extract_strided_slice %207 {offsets = [0, 0], sizes = [8, 32], strides = [1, 1]} : vector<8x64xf32> to vector<8x32xf32>
    %209 = vector.extract_strided_slice %207 {offsets = [0, 32], sizes = [8, 32], strides = [1, 1]} : vector<8x64xf32> to vector<8x32xf32>
    %c0_78 = arith.constant 0 : index
    %c160_79 = arith.constant 160 : index
    %210 = vector.load %arg5[%c0_78, %c160_79] : memref<8x256xf32, #tpu.memory_space<vmem>>, vector<8x32xf32>
    %211 = arith.addf %210, %208 : vector<8x32xf32>
    %c0_80 = arith.constant 0 : index
    %c160_81 = arith.constant 160 : index
    %212 = vector.load %arg5[%c0_80, %c160_81] : memref<8x256xf32, #tpu.memory_space<vmem>>, vector<8x32xf32>
    tpu.vector_store %arg5[%c0_80, %c160_81], %211 {strides = array<i32>} : memref<8x256xf32, #tpu.memory_space<vmem>>, vector<8x32xf32>,
    %c0_82 = arith.constant 0 : index
    %c64_83 = arith.constant 64 : index
    %213 = vector.load %arg5[%c0_82, %c64_83] : memref<8x256xf32, #tpu.memory_space<vmem>>, vector<8x32xf32>
    %214 = arith.addf %213, %209 : vector<8x32xf32>
    %c0_84 = arith.constant 0 : index
    %c64_85 = arith.constant 64 : index
    %215 = vector.load %arg5[%c0_84, %c64_85] : memref<8x256xf32, #tpu.memory_space<vmem>>, vector<8x32xf32>
    tpu.vector_store %arg5[%c0_84, %c64_85], %214 {strides = array<i32>} : memref<8x256xf32, #tpu.memory_space<vmem>>, vector<8x32xf32>,
    %c48 = arith.constant 48 : index
    %c0_86 = arith.constant 0 : index
    %216 = vector.load %arg7[%c48, %c0_86] : memref<64x256xf32, #tpu.memory_space<vmem>>, vector<8x256xf32>
    %217 = arith.truncf %202 : vector<8x64xf32> to vector<8x64xbf16>
    %cst_87 = arith.constant dense<0.000000e+00> : vector<8x256xf32>
    %218 = tpu.matmul %217, %7, %cst_87 {dimension_numbers = #tpu.dot_dimension_numbers<[1], [0], [0], [1], [0, 0, 1, 1], [], []>} : vector<8x64xbf16>, vector<64x256xbf16>, vector<8x256xf32> -> vector<8x256xf32>
    %219 = arith.addf %216, %218 : vector<8x256xf32>
    %220 = vector.extract_strided_slice %219 {offsets = [0, 0], sizes = [8, 192], strides = [1, 1]} : vector<8x256xf32> to vector<8x192xf32>
    %221 = arith.negf %220 : vector<8x192xf32>
    %222 = math.exp %221 : vector<8x192xf32>
    %cst_88 = arith.constant 1.000000e+00 : f32
    %223 = vector.broadcast %cst_88 : f32 to vector<8x192xf32>
    %224 = arith.addf %223, %222 : vector<8x192xf32>
    %225 = arith.divf %223, %224 : vector<8x192xf32>
    %226 = vector.extract_strided_slice %219 {offsets = [0, 192], sizes = [8, 64], strides = [1, 1]} : vector<8x256xf32> to vector<8x64xf32>
    %227 = math.tanh %226 : vector<8x64xf32>
    %228 = vector.extract_strided_slice %225 {offsets = [0, 64], sizes = [8, 64], strides = [1, 1]} : vector<8x192xf32> to vector<8x64xf32>
    %229 = arith.mulf %228, %203 : vector<8x64xf32>
    %230 = vector.extract_strided_slice %225 {offsets = [0, 0], sizes = [8, 64], strides = [1, 1]} : vector<8x192xf32> to vector<8x64xf32>
    %231 = arith.mulf %230, %227 : vector<8x64xf32>
    %232 = arith.addf %229, %231 : vector<8x64xf32>
    %233 = vector.extract_strided_slice %225 {offsets = [0, 128], sizes = [8, 64], strides = [1, 1]} : vector<8x192xf32> to vector<8x64xf32>
    %234 = math.tanh %232 : vector<8x64xf32>
    %235 = arith.mulf %233, %234 : vector<8x64xf32>
    %c48_89 = arith.constant 48 : index
    %c0_90 = arith.constant 0 : index
    %236 = vector.load %arg1[%c48_89, %c0_90] : memref<64x64xf32, #tpu.memory_space<vmem>>, vector<8x64xf32>
    %cst_91 = arith.constant 5.000000e-01 : f32
    %237 = vector.broadcast %cst_91 : f32 to vector<8x64xf32>
    %238 = arith.cmpf ogt, %236, %237 : vector<8x64xf32>
    %239 = arith.select %238, %235, %202 : vector<8x64xi1>, vector<8x64xf32>
    %240 = arith.select %238, %232, %203 : vector<8x64xi1>, vector<8x64xf32>
    %cst_92 = arith.constant 0.000000e+00 : f32
    %241 = vector.broadcast %cst_92 : f32 to vector<8x64xf32>
    %242 = arith.select %238, %239, %241 : vector<8x64xi1>, vector<8x64xf32>
    %cst_93 = arith.constant 5.000000e-01 : f32
    %243 = vector.broadcast %cst_93 : f32 to vector<8x64xf32>
    %244 = arith.mulf %242, %243 : vector<8x64xf32>
    %245 = vector.extract_strided_slice %244 {offsets = [0, 0], sizes = [8, 32], strides = [1, 1]} : vector<8x64xf32> to vector<8x32xf32>
    %246 = vector.extract_strided_slice %244 {offsets = [0, 32], sizes = [8, 32], strides = [1, 1]} : vector<8x64xf32> to vector<8x32xf32>
    %c0_94 = arith.constant 0 : index
    %c192_95 = arith.constant 192 : index
    %247 = vector.load %arg5[%c0_94, %c192_95] : memref<8x256xf32, #tpu.memory_space<vmem>>, vector<8x32xf32>
    %248 = arith.addf %247, %245 : vector<8x32xf32>
    %c0_96 = arith.constant 0 : index
    %c192_97 = arith.constant 192 : index
    %249 = vector.load %arg5[%c0_96, %c192_97] : memref<8x256xf32, #tpu.memory_space<vmem>>, vector<8x32xf32>
    tpu.vector_store %arg5[%c0_96, %c192_97], %248 {strides = array<i32>} : memref<8x256xf32, #tpu.memory_space<vmem>>, vector<8x32xf32>,
    %c0_98 = arith.constant 0 : index
    %c32_99 = arith.constant 32 : index
    %250 = vector.load %arg5[%c0_98, %c32_99] : memref<8x256xf32, #tpu.memory_space<vmem>>, vector<8x32xf32>
    %251 = arith.addf %250, %246 : vector<8x32xf32>
    %c0_100 = arith.constant 0 : index
    %c32_101 = arith.constant 32 : index
    %252 = vector.load %arg5[%c0_100, %c32_101] : memref<8x256xf32, #tpu.memory_space<vmem>>, vector<8x32xf32>
    tpu.vector_store %arg5[%c0_100, %c32_101], %251 {strides = array<i32>} : memref<8x256xf32, #tpu.memory_space<vmem>>, vector<8x32xf32>,
    %c56 = arith.constant 56 : index
    %c0_102 = arith.constant 0 : index
    %253 = vector.load %arg7[%c56, %c0_102] : memref<64x256xf32, #tpu.memory_space<vmem>>, vector<8x256xf32>
    %254 = arith.truncf %239 : vector<8x64xf32> to vector<8x64xbf16>
    %cst_103 = arith.constant dense<0.000000e+00> : vector<8x256xf32>
    %255 = tpu.matmul %254, %7, %cst_103 {dimension_numbers = #tpu.dot_dimension_numbers<[1], [0], [0], [1], [0, 0, 1, 1], [], []>} : vector<8x64xbf16>, vector<64x256xbf16>, vector<8x256xf32> -> vector<8x256xf32>
    %256 = arith.addf %253, %255 : vector<8x256xf32>
    %257 = vector.extract_strided_slice %256 {offsets = [0, 0], sizes = [8, 192], strides = [1, 1]} : vector<8x256xf32> to vector<8x192xf32>
    %258 = arith.negf %257 : vector<8x192xf32>
    %259 = math.exp %258 : vector<8x192xf32>
    %cst_104 = arith.constant 1.000000e+00 : f32
    %260 = vector.broadcast %cst_104 : f32 to vector<8x192xf32>
    %261 = arith.addf %260, %259 : vector<8x192xf32>
    %262 = arith.divf %260, %261 : vector<8x192xf32>
    %263 = vector.extract_strided_slice %256 {offsets = [0, 192], sizes = [8, 64], strides = [1, 1]} : vector<8x256xf32> to vector<8x64xf32>
    %264 = math.tanh %263 : vector<8x64xf32>
    %265 = vector.extract_strided_slice %262 {offsets = [0, 64], sizes = [8, 64], strides = [1, 1]} : vector<8x192xf32> to vector<8x64xf32>
    %266 = arith.mulf %265, %240 : vector<8x64xf32>
    %267 = vector.extract_strided_slice %262 {offsets = [0, 0], sizes = [8, 64], strides = [1, 1]} : vector<8x192xf32> to vector<8x64xf32>
    %268 = arith.mulf %267, %264 : vector<8x64xf32>
    %269 = arith.addf %266, %268 : vector<8x64xf32>
    %270 = vector.extract_strided_slice %262 {offsets = [0, 128], sizes = [8, 64], strides = [1, 1]} : vector<8x192xf32> to vector<8x64xf32>
    %271 = math.tanh %269 : vector<8x64xf32>
    %272 = arith.mulf %270, %271 : vector<8x64xf32>
    %c56_105 = arith.constant 56 : index
    %c0_106 = arith.constant 0 : index
    %273 = vector.load %arg1[%c56_105, %c0_106] : memref<64x64xf32, #tpu.memory_space<vmem>>, vector<8x64xf32>
    %cst_107 = arith.constant 5.000000e-01 : f32
    %274 = vector.broadcast %cst_107 : f32 to vector<8x64xf32>
    %275 = arith.cmpf ogt, %273, %274 : vector<8x64xf32>
    %276 = arith.select %275, %272, %239 : vector<8x64xi1>, vector<8x64xf32>
    %cst_108 = arith.constant 0.000000e+00 : f32
    %277 = vector.broadcast %cst_108 : f32 to vector<8x64xf32>
    %278 = arith.select %275, %276, %277 : vector<8x64xi1>, vector<8x64xf32>
    %cst_109 = arith.constant 5.000000e-01 : f32
    %279 = vector.broadcast %cst_109 : f32 to vector<8x64xf32>
    %280 = arith.mulf %278, %279 : vector<8x64xf32>
    %281 = vector.extract_strided_slice %280 {offsets = [0, 0], sizes = [8, 32], strides = [1, 1]} : vector<8x64xf32> to vector<8x32xf32>
    %282 = vector.extract_strided_slice %280 {offsets = [0, 32], sizes = [8, 32], strides = [1, 1]} : vector<8x64xf32> to vector<8x32xf32>
    %c0_110 = arith.constant 0 : index
    %c224_111 = arith.constant 224 : index
    %283 = vector.load %arg5[%c0_110, %c224_111] : memref<8x256xf32, #tpu.memory_space<vmem>>, vector<8x32xf32>
    %284 = arith.addf %283, %281 : vector<8x32xf32>
    %c0_112 = arith.constant 0 : index
    %c224_113 = arith.constant 224 : index
    %285 = vector.load %arg5[%c0_112, %c224_113] : memref<8x256xf32, #tpu.memory_space<vmem>>, vector<8x32xf32>
    tpu.vector_store %arg5[%c0_112, %c224_113], %284 {strides = array<i32>} : memref<8x256xf32, #tpu.memory_space<vmem>>, vector<8x32xf32>,
    %c0_114 = arith.constant 0 : index
    %c0_115 = arith.constant 0 : index
    %286 = vector.load %arg5[%c0_114, %c0_115] : memref<8x256xf32, #tpu.memory_space<vmem>>, vector<8x32xf32>
    %287 = arith.addf %286, %282 : vector<8x32xf32>
    %c0_116 = arith.constant 0 : index
    %c0_117 = arith.constant 0 : index
    %288 = vector.load %arg5[%c0_116, %c0_117] : memref<8x256xf32, #tpu.memory_space<vmem>>, vector<8x32xf32>
    tpu.vector_store %arg5[%c0_116, %c0_117], %287 {strides = array<i32>} : memref<8x256xf32, #tpu.memory_space<vmem>>, vector<8x32xf32>,
    %289 = vector.extract_strided_slice %276 {offsets = [0, 0], sizes = [8, 32], strides = [1, 1]} : vector<8x64xf32> to vector<8x32xf32>
    %290 = vector.extract_strided_slice %276 {offsets = [0, 32], sizes = [8, 32], strides = [1, 1]} : vector<8x64xf32> to vector<8x32xf32>
    %291 = arith.addf %289, %290 : vector<8x32xf32>
    %cst_118 = arith.constant 5.000000e-01 : f32
    %292 = vector.broadcast %cst_118 : f32 to vector<8x32xf32>
    %293 = arith.mulf %291, %292 : vector<8x32xf32>
    %c0_119 = arith.constant 0 : index
    %c0_120 = arith.constant 0 : index
    %294 = vector.load %arg6[%c0_119, %c0_120] : memref<8x32xf32, #tpu.memory_space<vmem>>, vector<8x32xf32>
    tpu.vector_store %arg6[%c0_119, %c0_120], %293 {strides = array<i32>} : memref<8x32xf32, #tpu.memory_space<vmem>>, vector<8x32xf32>,
    return
  }
}

</mosaic_0001>

<bundles_post_ra>
// kernel: rnn_model_forward.1
= control target key start
LH: loop header
LB: loop body
LE: loop exit
PB: predicated region body
PF: predicated region fallthrough
CT: control target
= control target key end

     0   :  { %vm105_vm0 = vcmask 523264   ;;  %v1382_v49 = vmov 0   ;;  %s1383_s15 = smov 64   ;;  %vm338_vm10 = vcmask 261120   ;;  %s1384_s12 = smov 96   ;;  %s1922_s2 = inlined_call_operand.vmem [shape: bf16[64,256], index: 2, kind: input, shape index: {}]   ;;  %s1923_s4 = inlined_call_operand.vmem [shape: bf16[64,256], index: 4, kind: input, shape index: {}]   ;;  %s1924_s0 = inlined_call_operand.vmem [shape: bf16[64,64], index: 0, kind: input, shape index: {}]   ;;  %s1925_s3 = inlined_call_operand.vmem [shape: f32[1,256], index: 3, kind: input, shape index: {}]   ;;  %s1926_s1 = inlined_call_operand.vmem [shape: f32[64,64], index: 1, kind: input, shape index: {}]   ;;  %s1927_s5 = inlined_call_operand.vmem [shape: f32[8,256], index: 5, kind: output, shape index: {0}]   ;;  %s1928_s6 = inlined_call_operand.vmem [shape: f32[8,32], index: 6, kind: output, shape index: {1}]  }
   0x1   :  { %v1272_v0 = vld [vmem:[%s1922_s2 + $0x34] sm:$0xf]  ;;  %v1188_v1 = vld [vmem:[%s1922_s2 + $0x38] sm:$0xf0]  ;;  %v1270_v5 = vld [vmem:[%s1922_s2 + $0x24] sm:$0xf] }
   0x2   :  { %v1280_v2 = vld [vmem:[%s1923_s4 + $0x34] sm:$0xf]  ;;  %v1191_v3 = vor.u32 %v1272_v0, %v1188_v1  ;;  %v1228_v4 = vld [vmem:[%s1923_s4 + $0x38] sm:$0xf0]  ;;  %v1180_v6 = vld [vmem:[%s1922_s2 + $0x28] sm:$0xf0] }
   0x3   :  { %v1439_v7 = vor.u32 %v1280_v2, %v1228_v4  ;;  %v1278_v8 = vld [vmem:[%s1923_s4 + $0x24] sm:$0xf]  ;;  %v1220_v9 = vld [vmem:[%s1923_s4 + $0x28] sm:$0xf0]  ;;  %v1183_v10 = vor.u32 %v1270_v5, %v1180_v6  ;;  %v1268_v12 = vld [vmem:[%s1922_s2 + $0x14] sm:$0xf] }
   0x4   :  { %151 = vmatpush.bf16.msra.mxu1 %v1191_v3  ;;  %v1448_v11 = vor.u32 %v1278_v8, %v1220_v9  ;;  %v1172_v13 = vld [vmem:[%s1922_s2 + $0x18] sm:$0xf0]  ;;  %v1276_v14 = vld [vmem:[%s1923_s4 + $0x14] sm:$0xf]  ;;  %v1226_v16 = vld [vmem:[%s1923_s4 + $0x30] sm:$0xf] }
   0x5   :  { %262 = vmatpush.bf16.msra.mxu3 %v1439_v7  ;;  %v1212_v15 = vld [vmem:[%s1923_s4 + $0x18] sm:$0xf0]  ;;  %v1281_v17 = vld [vmem:[%s1923_s4 + $0x34] sm:$0xf0]  ;;  %v1186_v18 = vld [vmem:[%s1922_s2 + $0x30] sm:$0xf]  ;;  %v1175_v20 = vor.u32 %v1268_v12, %v1172_v13 }
   0x6   :  { %v1273_v19 = vld [vmem:[%s1922_s2 + $0x34] sm:$0xf0]  ;;  %v1474_v21 = vor.u32 %v1281_v17, %v1226_v16  ;;  %v1218_v23 = vld [vmem:[%s1923_s4 + $0x20] sm:$0xf]  ;;  %v1279_v24 = vld [vmem:[%s1923_s4 + $0x24] sm:$0xf0]  ;;  %v1486_v26 = vor.u32 %v1276_v14, %v1212_v15 }
   0x7   :  { %v1187_v22 = vor.u32 %v1273_v19, %v1186_v18  ;;  %v1178_v25 = vld [vmem:[%s1922_s2 + $0x20] sm:$0xf]  ;;  %v1266_v27 = vld [vmem:[%s1922_s2 + $0x4] sm:$0xf]  ;;  %v1164_v28 = vld [vmem:[%s1922_s2 + $0x8] sm:$0xf0]  ;;  %v1504_v32 = vor.u32 %v1279_v24, %v1218_v23 }
   0x8   :  { %152 = vmatpush.bf16.msra.mxu1 %v1183_v10  ;;  %v1271_v29 = vld [vmem:[%s1922_s2 + $0x24] sm:$0xf0]  ;;  %v1274_v30 = vld [vmem:[%s1923_s4 + $0x4] sm:$0xf]  ;;  %v1204_v31 = vld [vmem:[%s1923_s4 + $0x8] sm:$0xf0]  ;;  %249 = vmatpush.bf16.msra.mxu2 %v1474_v21  ;;  %v1167_v38 = vor.u32 %v1266_v27, %v1164_v28 }
   0x9   :  { %263 = vmatpush.bf16.msra.mxu3 %v1448_v11  ;;  %122 = vmatpush.bf16.msra.mxu0 %v1187_v22  ;;  %v1179_v33 = vor.u32 %v1271_v29, %v1178_v25  ;;  %v1210_v34 = vld [vmem:[%s1923_s4 + $0x10] sm:$0xf]  ;;  %v1277_v35 = vld [vmem:[%s1923_s4 + $0x14] sm:$0xf0]  ;;  %v1519_v39 = vor.u32 %v1274_v30, %v1204_v31  ;;  %v1262_v40 = vld [vmem:[%s1924_s0] sm:$0xff] }
   0xa   :  { %v1170_v36 = vld [vmem:[%s1922_s2 + $0x10] sm:$0xf]  ;;  %v1269_v37 = vld [vmem:[%s1922_s2 + $0x14] sm:$0xf0]  ;;  %v1525_v41 = vor.u32 %v1277_v35, %v1210_v34  ;;  %v1202_v43 = vld [vmem:[%s1923_s4] sm:$0xf] }
   0xb   :  { %v1171_v42 = vor.u32 %v1269_v37, %v1170_v36  ;;  %v1275_v44 = vld [vmem:[%s1923_s4 + $0x4] sm:$0xf0]  ;;  %v1162_v45 = vld [vmem:[%s1922_s2] sm:$0xf] }
   0xc   :  { %153 = vmatpush.bf16.msra.mxu1 %v1175_v20  ;;  %250 = vmatpush.bf16.msra.mxu2 %v1504_v32  ;;  %v1267_v46 = vld [vmem:[%s1922_s2 + $0x4] sm:$0xf0]  ;;  %v1542_v47 = vor.u32 %v1275_v44, %v1202_v43  ;;  %v39_v50 = vld [vmem:[%s1925_s3] sm:$0x3]  ;;  %s1385_s2 = smov 32  }
   0xd   :  { %264 = vmatpush.bf16.msra.mxu3 %v1486_v26  ;;  %123 = vmatpush.bf16.msra.mxu0 %v1179_v33  ;;  %v1163_v48 = vor.u32 %v1267_v46, %v1162_v45  ;;  %v1581_v51 = vperm.slane %v39_v50, 1  ;;  %v1585_v60 = vperm.slane %v39_v50, 0  ;;  %v329_v35 = vld [vmem:[%s1926_s1] sm:$0xff] }
   0xe   :  { %vm330_vm9 = vcmp.gt.f32.partialorder %v329_v35, 0.5 }
  0x10   :  { %154 = vmatpush.bf16.msra.mxu1 %v1167_v38  ;;  %251 = vmatpush.bf16.msra.mxu2 %v1525_v41 }
  0x11   :  { %265 = vmatpush.bf16.msra.mxu3 %v1519_v39  ;;  %124 = vmatpush.bf16.msra.mxu0 %v1171_v42 }
  0x13   :  { %1196 = vmatmul.msk.bf16.vlgmr.msra.gmra.mxu1 %vm105_vm0, %v1262_v40 }
  0x14   :  { %701 = vmatpush.bf16.msrb.mxu1 %v1439_v7  ;;  %266 = vmatmul.bf16.vlgmr.msra.gmra.mxu3 %v1382_v49 }
  0x15   :  { %369 = vmatpush.bf16.msrb.mxu3 %v1439_v7  ;;  %252 = vmatpush.bf16.msra.mxu2 %v1542_v47 }
  0x16   :  { %125 = vmatpush.bf16.msra.mxu0 %v1163_v48 }
  0x18   :  { %702 = vmatpush.bf16.msrb.mxu1 %v1448_v11  ;;  %253 = vmatmul.bf16.vlgmr.msra.gmra.mxu2 %v1382_v49 }
  0x19   :  { %356 = vmatpush.bf16.msrb.mxu2 %v1474_v21  ;;  %370 = vmatpush.bf16.msrb.mxu3 %v1448_v11 }
  0x1a   :  { %688 = vmatpush.bf16.msrb.mxu0 %v1474_v21 }
  0x1b   :  { %1192 = vmatmul.msk.bf16.vlgmr.msra.gmra.mxu0 %vm105_vm0, %v1262_v40 }
  0x1c   :  { %703 = vmatpush.bf16.msrb.mxu1 %v1486_v26 }
  0x1d   :  { %357 = vmatpush.bf16.msrb.mxu2 %v1504_v32  ;;  %371 = vmatpush.bf16.msrb.mxu3 %v1486_v26 }
  0x1e   :  { %689 = vmatpush.bf16.msrb.mxu0 %v1504_v32 }
  0x20   :  { %704 = vmatpush.bf16.msrb.mxu1 %v1519_v39 }
  0x21   :  { %358 = vmatpush.bf16.msrb.mxu2 %v1525_v41  ;;  %372 = vmatpush.bf16.msrb.mxu3 %v1519_v39 }
  0x22   :  { %690 = vmatpush.bf16.msrb.mxu0 %v1525_v41 }
  0x24   :  { %929 = vmatpush.bf16.msra.mxu1 %v1439_v7 }
  0x25   :  { %481 = vmatpush.bf16.msra.mxu3 %v1439_v7  ;;  %359 = vmatpush.bf16.msrb.mxu2 %v1542_v47 }
  0x26   :  { %691 = vmatpush.bf16.msrb.mxu0 %v1542_v47 }
  0x28   :  { %930 = vmatpush.bf16.msra.mxu1 %v1448_v11 }
  0x29   :  { %468 = vmatpush.bf16.msra.mxu2 %v1474_v21  ;;  %482 = vmatpush.bf16.msra.mxu3 %v1448_v11 }
  0x2a   :  { %916 = vmatpush.bf16.msra.mxu0 %v1474_v21 }
  0x2c   :  { %931 = vmatpush.bf16.msra.mxu1 %v1486_v26 }
  0x2d   :  { %469 = vmatpush.bf16.msra.mxu2 %v1504_v32  ;;  %483 = vmatpush.bf16.msra.mxu3 %v1486_v26 }
  0x2e   :  { %917 = vmatpush.bf16.msra.mxu0 %v1504_v32 }
  0x30   :  { %932 = vmatpush.bf16.msra.mxu1 %v1519_v39 }
  0x31   :  { %470 = vmatpush.bf16.msra.mxu2 %v1525_v41  ;;  %484 = vmatpush.bf16.msra.mxu3 %v1519_v39 }
  0x32   :  { %918 = vmatpush.bf16.msra.mxu0 %v1525_v41 }
  0x35   :  { %471 = vmatpush.bf16.msra.mxu2 %v1542_v47 }
  0x36   :  { %919 = vmatpush.bf16.msra.mxu0 %v1542_v47 }
  0x90   :  { %v156_v52 = vpop.f32.mrf.mxu1 }
  0x91   :  { %v157_v53 = vadd.f32 %v156_v52, %v1581_v51 }
  0x97   :  { %v267_v54 = vpop.f32.mrf.mxu3 }
  0x98   :  { %v272_v55 = vadd.f32 %v267_v54, %v157_v53  ;;  %v127_v61 = vpop.f32.mrf.mxu0  ;;  %v158_v45 = vpop.f32.mrf.mxu1 }
  0x99   :  { %v128_v62 = vadd.f32 %v127_v61, %v1585_v60  ;;  %v159_v46 = vadd.f32 %v158_v45, %v1581_v51 }
  0x9a   :  { %1286 = vtanh.f32 %v272_v55  ;;  %v1233_v22 = vmul.f32 -1.442695, %v272_v55 }
  0x9b   :  { %v254_v56 = vpop.f32.mrf.mxu2 }
  0x9c   :  { %v271_v63 = vadd.f32 %v254_v56, %v128_v62 }
  0x9e   :  { %v1232_v0 = vmul.f32 -1.442695, %v271_v63 }
  0x9f   :  { %v269_v57 = vpop.f32.mrf.mxu3 }
  0xa0   :  { %v1287_v58 = vpop.eup %1286  ;;  %1288 = vpow2.f32 %v1232_v0  ;;  %v129_v57 = vpop.f32.mrf.mxu0 }
  0xa1   :  { %314 = vrot.lane.b32.xlu0 %v1287_v58, %s1383_s15  ;;  %v130_v58 = vadd.f32 %v129_v57, %v1585_v60 }
  0xa3   :  { %v256_v59 = vpop.f32.mrf.mxu2 }
  0xa6   :  { %v1289_v1 = vpop.eup %1288 }
  0xa7   :  { %v279_v2 = vadd.f32 1.0, %v1289_v1 }
  0xa9   :  { %1290 = vrcp.f32 %v279_v2  ;;  %vm286_vm1 = vweird.f32 %v279_v2  ;;  %v292_v8 = vand.u32 2147483648, %v279_v2  ;;  %v290_v10 = vand.u32 2147483647, %v279_v2 }
  0xab   :  { %v293_v12 = vor.u32 1.1754944e-38, %v292_v8  ;;  %vm291_vm4 = vcmp.eq.f32.partialorder %v290_v10, 8.507059e+37 }
  0xaf   :  { %v1291_v3 = vpop.eup %1290 }
  0xb0   :  { %v282_v4 = vmul.f32 %v1291_v3, %v279_v2  ;;  %vm287_vm2 = vweird.f32 %v1291_v3 }
  0xb1   :  { %vm288_vm3 = vmor %vm286_vm1, %vm287_vm2 }
  0xb2   :  { %v283_v5 = vsub.f32 1.0, %v282_v4 }
  0xb4   :  { %v284_v6 = vmul.f32 %v1291_v3, %v283_v5 }
  0xb6   :  { %v285_v9 = vadd.f32 %v1291_v3, %v284_v6 }
  0xb8   :  { %v289_v13 = vsel %vm288_vm3, %v1291_v3, %v285_v9 }
  0xb9   :  { %v294_v15 = vsel %vm291_vm4, %v293_v12, %v289_v13 }
  0xba   :  { %v312_v17 = vmul.f32 0.0, %v294_v15 }
 0x113   :  { %v315_v14 = vpop.permute.xlu0 %314 }
 0x114   :  { %v317_v16 = vmul.f32 %v315_v14, %v294_v15 }
 0x116   :  { %319 = vrot.lane.b32.xlu0 %v317_v16, %s1383_s15 }
 0x188   :  { %v320_v18 = vpop.permute.xlu0 %319 }
 0x189   :  { %v322_v19 = vadd.f32 %v320_v18, %v312_v17 }
 0x18b   :  { %1292 = vtanh.f32 %v322_v19 }
 0x18c   :  { %1294 = vpow2.f32 %v1233_v22 }
 0x191   :  { %v1293_v20 = vpop.eup %1292 }
 0x192   :  { %325 = vrot.lane.b32.xlu1 %v1293_v20, %s1383_s15  ;;  %v1295_v23 = vpop.eup %1294  ;;  %v440_v20 = vld [vmem:[%s1926_s1 + $0x8] sm:$0xff] }
 0x193   :  { %v280_v24 = vadd.f32 1.0, %v1295_v23  ;;  %vm441_vm15 = vcmp.gt.f32.partialorder %v440_v20, 0.5 }
 0x195   :  { %1296 = vrcp.f32 %v280_v24  ;;  %v307_v31 = vand.u32 2147483648, %v280_v24  ;;  %vm301_vm6 = vweird.f32 %v280_v24  ;;  %v305_v33 = vand.u32 2147483647, %v280_v24 }
 0x197   :  { %v308_v36 = vor.u32 1.1754944e-38, %v307_v31  ;;  %vm306_vm8 = vcmp.eq.f32.partialorder %v305_v33, 8.507059e+37 }
 0x19a   :  { %333 = vrot.lane.b32.xlu1 %v322_v19, %s1383_s15 }
 0x19b   :  { %v1297_v25 = vpop.eup %1296 }
 0x19c   :  { %v297_v27 = vmul.f32 %v1297_v25, %v280_v24  ;;  %vm302_vm5 = vweird.f32 %v1297_v25 }
 0x19d   :  { %vm303_vm7 = vmor %vm301_vm6, %vm302_vm5 }
 0x19e   :  { %v298_v28 = vsub.f32 1.0, %v297_v27 }
 0x1a0   :  { %v299_v29 = vmul.f32 %v1297_v25, %v298_v28 }
 0x1a2   :  { %v300_v30 = vadd.f32 %v1297_v25, %v299_v29 }
 0x1a4   :  { %v304_v34 = vsel %vm303_vm7, %v1297_v25, %v300_v30  ;;  %v1263_v25 = vld [vmem:[%s1924_s0 + $0x8] sm:$0xff] }
 0x1a5   :  { %v309_v37 = vsel %vm306_vm8, %v308_v36, %v304_v34  ;;  %1197 = vmatmul.msk.bf16.gmra.mxu1 %vm105_vm0, %v1263_v25  ;;  %1193 = vmatmul.msk.bf16.gmra.mxu0 %vm105_vm0, %v1263_v25 }
 0x204   :  { %v326_v38 = vpop.permute.xlu1 %325 }
 0x205   :  { %v328_v40 = vmul.f32 %v326_v38, %v309_v37 }
 0x207   :  { %v1595_v42 = vsel %vm330_vm9, %v328_v40, 0.0 }
 0x208   :  { %v348_v43 = vpack.c.bf16 %v1595_v42, %v1595_v42  ;;  %v1600_v44 = vmul.f32 0.5, %v1595_v42 }
 0x20a   :  { %1234 = vmatmul.msk.bf16.vlgmr.msrb.gmra.mxu2 %vm105_vm0, %v348_v43  ;;  %1235 = vmatmul.msk.bf16.vlgmr.msrb.gmra.mxu3 %vm105_vm0, %v348_v43  ;;  %339 = vst.msk [vmem:[%s1927_s5] sm:$0xff] %vm338_vm10, %v1600_v44 }
 0x20b   :  { %591 = vmatpush.bf16.msrb.mxu3 %v1439_v7  ;;  %578 = vmatpush.bf16.msrb.mxu2 %v1474_v21 }
 0x20c   :  { %v334_v55 = vpop.permute.xlu1 %333 }
 0x20d   :  { %v336_v56 = vsel %vm330_vm9, %v334_v55, 0.0 }
 0x20f   :  { %592 = vmatpush.bf16.msrb.mxu3 %v1448_v11  ;;  %579 = vmatpush.bf16.msrb.mxu2 %v1504_v32 }
 0x213   :  { %593 = vmatpush.bf16.msrb.mxu3 %v1486_v26  ;;  %580 = vmatpush.bf16.msrb.mxu2 %v1525_v41 }
 0x217   :  { %594 = vmatpush.bf16.msrb.mxu3 %v1519_v39  ;;  %581 = vmatpush.bf16.msrb.mxu2 %v1542_v47 }
 0x222   :  { %v132_v57 = vpop.f32.mrf.mxu0 }
 0x28d   :  { %v361_v48 = vpop.f32.mrf.mxu2  ;;  %v374_v49 = vpop.f32.mrf.mxu3 }
 0x28e   :  { %v379_v50 = vadd.f32 %v374_v49, %v159_v46  ;;  %v378_v59 = vadd.f32 %v361_v48, %v130_v58  ;;  %v133_v58 = vadd.f32 %v132_v57, %v1585_v60 }
 0x290   :  { %1298 = vtanh.f32 %v379_v50  ;;  %v1236_v61 = vmul.f32 -1.442695, %v378_v59  ;;  %v1237_v19 = vmul.f32 -1.442695, %v379_v50 }
 0x292   :  { %1300 = vpow2.f32 %v1236_v61 }
 0x295   :  { %v363_v52 = vpop.f32.mrf.mxu2  ;;  %v376_v53 = vpop.f32.mrf.mxu3 }
 0x296   :  { %v1299_v54 = vpop.eup %1298 }
 0x297   :  { %425 = vrot.lane.b32.xlu2 %v1299_v54, %s1383_s15 }
 0x298   :  { %v1301_v62 = vpop.eup %1300 }
 0x299   :  { %v386_v63 = vadd.f32 1.0, %v1301_v62 }
 0x29b   :  { %1302 = vrcp.f32 %v386_v63  ;;  %v399_v5 = vand.u32 2147483648, %v386_v63  ;;  %vm393_vm12 = vweird.f32 %v386_v63  ;;  %v397_v6 = vand.u32 2147483647, %v386_v63 }
 0x29d   :  { %v400_v9 = vor.u32 1.1754944e-38, %v399_v5  ;;  %vm398_vm14 = vcmp.eq.f32.partialorder %v397_v6, 8.507059e+37 }
 0x29f   :  { %420 = vrot.lane.b32.xlu2 %v336_v56, %s1383_s15 }
 0x2a1   :  { %v1303_v0 = vpop.eup %1302 }
 0x2a2   :  { %v389_v1 = vmul.f32 %v1303_v0, %v386_v63  ;;  %vm394_vm11 = vweird.f32 %v1303_v0 }
 0x2a3   :  { %vm395_vm13 = vmor %vm393_vm12, %vm394_vm11 }
 0x2a4   :  { %v390_v2 = vsub.f32 1.0, %v389_v1 }
 0x2a6   :  { %v391_v3 = vmul.f32 %v1303_v0, %v390_v2 }
 0x2a8   :  { %v392_v4 = vadd.f32 %v1303_v0, %v391_v3 }
 0x2aa   :  { %v396_v8 = vsel %vm395_vm13, %v1303_v0, %v392_v4 }
 0x2ab   :  { %v401_v12 = vsel %vm398_vm14, %v400_v9, %v396_v8 }
 0x2f1   :  { %v426_v10 = vpop.permute.xlu2 %425 }
 0x2f2   :  { %v428_v13 = vmul.f32 %v426_v10, %v401_v12 }
 0x2f4   :  { %430 = vrot.lane.b32.xlu0 %v428_v13, %s1383_s15 }
 0x2f9   :  { %v421_v14 = vpop.permute.xlu2 %420 }
 0x2fa   :  { %v423_v15 = vmul.f32 %v421_v14, %v401_v12 }
 0x366   :  { %v431_v16 = vpop.permute.xlu0 %430 }
 0x367   :  { %v433_v17 = vadd.f32 %v431_v16, %v423_v15 }
 0x369   :  { %1304 = vtanh.f32 %v433_v17  ;;  %444 = vrot.lane.b32.xlu2 %v433_v17, %s1383_s15 }
 0x36a   :  { %1306 = vpow2.f32 %v1237_v19 }
 0x36f   :  { %v1305_v18 = vpop.eup %1304 }
 0x370   :  { %436 = vrot.lane.b32.xlu1 %v1305_v18, %s1383_s15  ;;  %v1307_v22 = vpop.eup %1306 }
 0x371   :  { %v387_v23 = vadd.f32 1.0, %v1307_v22 }
 0x373   :  { %1308 = vrcp.f32 %v387_v23  ;;  %v414_v34 = vand.u32 2147483648, %v387_v23  ;;  %vm408_vm2 = vweird.f32 %v387_v23  ;;  %v412_v35 = vand.u32 2147483647, %v387_v23 }
 0x375   :  { %v415_v37 = vor.u32 1.1754944e-38, %v414_v34  ;;  %vm413_vm4 = vcmp.eq.f32.partialorder %v412_v35, 8.507059e+37 }
 0x379   :  { %v1309_v28 = vpop.eup %1308 }
 0x37a   :  { %v404_v29 = vmul.f32 %v1309_v28, %v387_v23  ;;  %vm409_vm1 = vweird.f32 %v1309_v28 }
 0x37b   :  { %vm410_vm3 = vmor %vm408_vm2, %vm409_vm1 }
 0x37c   :  { %v405_v30 = vsub.f32 1.0, %v404_v29 }
 0x37e   :  { %v406_v31 = vmul.f32 %v1309_v28, %v405_v30 }
 0x380   :  { %v407_v33 = vadd.f32 %v1309_v28, %v406_v31 }
 0x382   :  { %v411_v36 = vsel %vm410_vm3, %v1309_v28, %v407_v33  ;;  %v552_v28 = vld [vmem:[%s1926_s1 + $0x10] sm:$0xff] }
 0x383   :  { %v416_v38 = vsel %vm413_vm4, %v415_v37, %v411_v36  ;;  %vm553_vm9 = vcmp.gt.f32.partialorder %v552_v28, 0.5 }
 0x3c3   :  { %v445_v24 = vpop.permute.xlu2 %444 }
 0x3c4   :  { %v1632_v27 = vsel %vm441_vm15, %v445_v24, %v336_v56 }
 0x3c5   :  { %532 = vrot.lane.b32.xlu1 %v1632_v27, %s1383_s15 }
 0x3e2   :  { %v437_v40 = vpop.permute.xlu1 %436 }
 0x3e3   :  { %v439_v43 = vmul.f32 %v437_v40, %v416_v38 }
 0x3e5   :  { %v1640_v45 = vsel %vm441_vm15, %v439_v43, %v1595_v42  ;;  %v1643_v46 = vsel %vm441_vm15, %v439_v43, 0.0  ;;  %v161_v42 = vpop.f32.mrf.mxu1 }
 0x3e6   :  { %v460_v48 = vpack.c.bf16 %v1640_v45, %v1640_v45  ;;  %v162_v49 = vadd.f32 %v161_v42, %v1581_v51 }
 0x3e8   :  { %1238 = vmatmul.msk.bf16.vlgmr.msra.gmra.mxu2 %vm105_vm0, %v460_v48  ;;  %1239 = vmatmul.msk.bf16.vlgmr.msra.gmra.mxu3 %vm105_vm0, %v460_v48 }
 0x3e9   :  { %815 = vmatpush.bf16.msra.mxu3 %v1439_v7  ;;  %802 = vmatpush.bf16.msra.mxu2 %v1474_v21 }
 0x3ed   :  { %816 = vmatpush.bf16.msra.mxu3 %v1448_v11  ;;  %803 = vmatpush.bf16.msra.mxu2 %v1504_v32 }
 0x3f1   :  { %817 = vmatpush.bf16.msra.mxu3 %v1486_v26  ;;  %804 = vmatpush.bf16.msra.mxu2 %v1525_v41 }
 0x3f5   :  { %818 = vmatpush.bf16.msra.mxu3 %v1519_v39  ;;  %805 = vmatpush.bf16.msra.mxu2 %v1542_v47 }
 0x437   :  { %v533_v14 = vpop.permute.xlu1 %532 }
 0x46b   :  { %v473_v50 = vpop.f32.mrf.mxu2  ;;  %v486_v52 = vpop.f32.mrf.mxu3 }
 0x46c   :  { %v491_v53 = vadd.f32 %v486_v52, %v162_v49  ;;  %v490_v59 = vadd.f32 %v473_v50, %v133_v58 }
 0x46e   :  { %1310 = vtanh.f32 %v491_v53  ;;  %v1240_v61 = vmul.f32 -1.442695, %v490_v59  ;;  %v1241_v19 = vmul.f32 -1.442695, %v491_v53 }
 0x470   :  { %1312 = vpow2.f32 %v1240_v61 }
 0x473   :  { %v475_v54 = vpop.f32.mrf.mxu2  ;;  %v488_v55 = vpop.f32.mrf.mxu3 }
 0x474   :  { %v1311_v56 = vpop.eup %1310 }
 0x475   :  { %537 = vrot.lane.b32.xlu0 %v1311_v56, %s1383_s15 }
 0x476   :  { %v1313_v62 = vpop.eup %1312 }
 0x477   :  { %v498_v63 = vadd.f32 1.0, %v1313_v62 }
 0x479   :  { %1314 = vrcp.f32 %v498_v63  ;;  %v511_v5 = vand.u32 2147483648, %v498_v63  ;;  %vm505_vm6 = vweird.f32 %v498_v63  ;;  %v509_v6 = vand.u32 2147483647, %v498_v63 }
 0x47b   :  { %v512_v9 = vor.u32 1.1754944e-38, %v511_v5  ;;  %vm510_vm8 = vcmp.eq.f32.partialorder %v509_v6, 8.507059e+37  ;;  %v1265_v5 = vld [vmem:[%s1924_s0 + $0x18] sm:$0xff] }
 0x47f   :  { %v1315_v0 = vpop.eup %1314 }
 0x480   :  { %v501_v1 = vmul.f32 %v1315_v0, %v498_v63  ;;  %vm506_vm5 = vweird.f32 %v1315_v0 }
 0x481   :  { %vm507_vm7 = vmor %vm505_vm6, %vm506_vm5 }
 0x482   :  { %v502_v2 = vsub.f32 1.0, %v501_v1 }
 0x484   :  { %v503_v3 = vmul.f32 %v1315_v0, %v502_v2 }
 0x486   :  { %v504_v4 = vadd.f32 %v1315_v0, %v503_v3 }
 0x488   :  { %v508_v8 = vsel %vm507_vm7, %v1315_v0, %v504_v4  ;;  %v1264_v4 = vld [vmem:[%s1924_s0 + $0x10] sm:$0xff] }
 0x489   :  { %v513_v12 = vsel %vm510_vm8, %v512_v9, %v508_v8  ;;  %1198 = vmatmul.msk.bf16.gmra.mxu1 %vm105_vm0, %v1264_v4  ;;  %1194 = vmatmul.msk.bf16.gmra.mxu0 %vm105_vm0, %v1264_v4 }
 0x48a   :  { %v535_v15 = vmul.f32 %v533_v14, %v513_v12 }
 0x499   :  { %1199 = vmatmul.msk.bf16.gmra.mxu1 %vm105_vm0, %v1265_v5  ;;  %1195 = vmatmul.msk.bf16.gmra.mxu0 %vm105_vm0, %v1265_v5 }
 0x4e7   :  { %v538_v10 = vpop.permute.xlu0 %537 }
 0x4e8   :  { %v540_v13 = vmul.f32 %v538_v10, %v513_v12 }
 0x4ea   :  { %542 = vrot.lane.b32.xlu2 %v540_v13, %s1383_s15 }
 0x544   :  { %v543_v16 = vpop.permute.xlu2 %542 }
 0x545   :  { %v545_v17 = vadd.f32 %v543_v16, %v535_v15 }
 0x547   :  { %1316 = vtanh.f32 %v545_v17  ;;  %556 = vrot.lane.b32.xlu1 %v545_v17, %s1383_s15 }
 0x548   :  { %1318 = vpow2.f32 %v1241_v19 }
 0x54d   :  { %v1317_v18 = vpop.eup %1316 }
 0x54e   :  { %548 = vrot.lane.b32.xlu0 %v1317_v18, %s1383_s15  ;;  %v1319_v20 = vpop.eup %1318 }
 0x54f   :  { %v499_v22 = vadd.f32 1.0, %v1319_v20 }
 0x551   :  { %1320 = vrcp.f32 %v499_v22  ;;  %v526_v34 = vand.u32 2147483648, %v499_v22  ;;  %vm520_vm12 = vweird.f32 %v499_v22  ;;  %v524_v35 = vand.u32 2147483647, %v499_v22 }
 0x553   :  { %v527_v37 = vor.u32 1.1754944e-38, %v526_v34  ;;  %vm525_vm14 = vcmp.eq.f32.partialorder %v524_v35, 8.507059e+37 }
 0x557   :  { %v1321_v23 = vpop.eup %1320 }
 0x558   :  { %v516_v24 = vmul.f32 %v1321_v23, %v499_v22  ;;  %vm521_vm11 = vweird.f32 %v1321_v23 }
 0x559   :  { %vm522_vm13 = vmor %vm520_vm12, %vm521_vm11 }
 0x55a   :  { %v517_v25 = vsub.f32 1.0, %v516_v24 }
 0x55c   :  { %v518_v29 = vmul.f32 %v1321_v23, %v517_v25  ;;  %v662_v25 = vld [vmem:[%s1926_s1 + $0x18] sm:$0xff] }
 0x55d   :  { %vm663_vm8 = vcmp.gt.f32.partialorder %v662_v25, 0.5 }
 0x55e   :  { %v519_v31 = vadd.f32 %v1321_v23, %v518_v29 }
 0x560   :  { %v523_v36 = vsel %vm522_vm13, %v1321_v23, %v519_v31 }
 0x561   :  { %v528_v38 = vsel %vm525_vm14, %v527_v37, %v523_v36 }
 0x5b9   :  { %v557_v30 = vpop.permute.xlu1 %556 }
 0x5ba   :  { %v1668_v33 = vsel %vm553_vm9, %v557_v30, %v1632_v27 }
 0x5bb   :  { %642 = vrot.lane.b32.xlu0 %v1668_v33, %s1383_s15 }
 0x5c0   :  { %v549_v40 = vpop.permute.xlu0 %548 }
 0x5c1   :  { %v551_v43 = vmul.f32 %v549_v40, %v528_v38 }
 0x5c3   :  { %v1674_v48 = vsel %vm553_vm9, %v551_v43, %v1640_v45  ;;  %v1677_v27 = vsel %vm553_vm9, %v551_v43, 0.0  ;;  %v163_v45 = vpop.f32.mrf.mxu1 }
 0x5c4   :  { %v570_v42 = vpack.c.bf16 %v1674_v48, %v1674_v48  ;;  %v164_v49 = vadd.f32 %v163_v45, %v1581_v51 }
 0x5c6   :  { %1242 = vmatmul.msk.bf16.vlgmr.msrb.gmra.mxu2 %vm105_vm0, %v570_v42  ;;  %1243 = vmatmul.msk.bf16.vlgmr.msrb.gmra.mxu3 %vm105_vm0, %v570_v42 }
 0x5c7   :  { %1043 = vmatpush.bf16.msrb.mxu3 %v1439_v7  ;;  %1030 = vmatpush.bf16.msrb.mxu2 %v1474_v21 }
 0x5cb   :  { %1044 = vmatpush.bf16.msrb.mxu3 %v1448_v11  ;;  %1031 = vmatpush.bf16.msrb.mxu2 %v1504_v32  ;;  %v134_v32 = vpop.f32.mrf.mxu0  ;;  %v166_v43 = vpop.f32.mrf.mxu1 }
 0x5cf   :  { %1045 = vmatpush.bf16.msrb.mxu3 %v1486_v26  ;;  %1032 = vmatpush.bf16.msrb.mxu2 %v1525_v41  ;;  %v135_v26 = vadd.f32 %v134_v32, %v1585_v60 }
 0x5d3   :  { %1046 = vmatpush.bf16.msrb.mxu3 %v1519_v39  ;;  %1033 = vmatpush.bf16.msrb.mxu2 %v1542_v47  ;;  %v137_v40 = vpop.f32.mrf.mxu0 }
 0x5db   :  { %v1721_v42 = vpop.f32.mrf.mxu0 }
 0x5e3   :  { %v1725_v45 = vpop.f32.mrf.mxu0 }
 0x62d   :  { %v643_v6 = vpop.permute.xlu0 %642 }
 0x649   :  { %v583_v50 = vpop.f32.mrf.mxu2  ;;  %v596_v52 = vpop.f32.mrf.mxu3 }
 0x64a   :  { %v601_v7 = vadd.f32 %v596_v52, %v164_v49  ;;  %v600_v41 = vadd.f32 %v583_v50, %v135_v26  ;;  %v1729_v50 = vpop.f32.mrf.mxu0 }
 0x64c   :  { %1322 = vtanh.f32 %v601_v7  ;;  %v1244_v54 = vmul.f32 -1.442695, %v600_v41  ;;  %v1245_v13 = vmul.f32 -1.442695, %v601_v7  ;;  %v138_v7 = vadd.f32 %v137_v40, %v1585_v60 }
 0x64e   :  { %1324 = vpow2.f32 %v1244_v54 }
 0x651   :  { %v585_v21 = vpop.f32.mrf.mxu2  ;;  %v598_v53 = vpop.f32.mrf.mxu3 }
 0x652   :  { %v1323_v11 = vpop.eup %1322 }
 0x653   :  { %647 = vrot.lane.b32.xlu2 %v1323_v11, %s1383_s15 }
 0x654   :  { %v1325_v39 = vpop.eup %1324 }
 0x655   :  { %v608_v47 = vadd.f32 1.0, %v1325_v39 }
 0x657   :  { %1326 = vrcp.f32 %v608_v47  ;;  %v621_v61 = vand.u32 2147483648, %v608_v47  ;;  %vm615_vm1 = vweird.f32 %v608_v47  ;;  %v619_v62 = vand.u32 2147483647, %v608_v47 }
 0x659   :  { %v622_v0 = vor.u32 1.1754944e-38, %v621_v61  ;;  %vm620_vm3 = vcmp.eq.f32.partialorder %v619_v62, 8.507059e+37 }
 0x65d   :  { %v1327_v55 = vpop.eup %1326 }
 0x65e   :  { %v611_v56 = vmul.f32 %v1327_v55, %v608_v47  ;;  %vm616_vm15 = vweird.f32 %v1327_v55 }
 0x65f   :  { %vm617_vm2 = vmor %vm615_vm1, %vm616_vm15 }
 0x660   :  { %v612_v57 = vsub.f32 1.0, %v611_v56 }
 0x662   :  { %v613_v58 = vmul.f32 %v1327_v55, %v612_v57 }
 0x664   :  { %v614_v59 = vadd.f32 %v1327_v55, %v613_v58 }
 0x666   :  { %v618_v63 = vsel %vm617_vm2, %v1327_v55, %v614_v59 }
 0x667   :  { %v623_v2 = vsel %vm620_vm3, %v622_v0, %v618_v63 }
 0x668   :  { %v645_v8 = vmul.f32 %v643_v6, %v623_v2 }
 0x6ad   :  { %v648_v1 = vpop.permute.xlu2 %647 }
 0x6ae   :  { %v650_v3 = vmul.f32 %v648_v1, %v623_v2 }
 0x6b0   :  { %652 = vrot.lane.b32.xlu1 %v650_v3, %s1383_s15 }
 0x722   :  { %v653_v9 = vpop.permute.xlu1 %652 }
 0x723   :  { %v655_v10 = vadd.f32 %v653_v9, %v645_v8 }
 0x725   :  { %1328 = vtanh.f32 %v655_v10  ;;  %666 = vrot.lane.b32.xlu0 %v655_v10, %s1383_s15 }
 0x726   :  { %1330 = vpow2.f32 %v1245_v13  ;;  %v772_v13 = vld [vmem:[%s1926_s1 + $0x20] sm:$0xff] }
 0x727   :  { %vm773_vm14 = vcmp.gt.f32.partialorder %v772_v13, 0.5 }
 0x72b   :  { %v1329_v12 = vpop.eup %1328 }
 0x72c   :  { %658 = vrot.lane.b32.xlu2 %v1329_v12, %s1383_s15  ;;  %v1331_v14 = vpop.eup %1330 }
 0x72d   :  { %v609_v15 = vadd.f32 1.0, %v1331_v14 }
 0x72f   :  { %1332 = vrcp.f32 %v609_v15  ;;  %v636_v22 = vand.u32 2147483648, %v609_v15  ;;  %vm630_vm5 = vweird.f32 %v609_v15  ;;  %v634_v23 = vand.u32 2147483647, %v609_v15 }
 0x731   :  { %v637_v28 = vor.u32 1.1754944e-38, %v636_v22  ;;  %vm635_vm7 = vcmp.eq.f32.partialorder %v634_v23, 8.507059e+37 }
 0x735   :  { %v1333_v16 = vpop.eup %1332 }
 0x736   :  { %v626_v17 = vmul.f32 %v1333_v16, %v609_v15  ;;  %vm631_vm4 = vweird.f32 %v1333_v16 }
 0x737   :  { %vm632_vm6 = vmor %vm630_vm5, %vm631_vm4 }
 0x738   :  { %v627_v18 = vsub.f32 1.0, %v626_v17 }
 0x73a   :  { %v628_v19 = vmul.f32 %v1333_v16, %v627_v18 }
 0x73c   :  { %v629_v20 = vadd.f32 %v1333_v16, %v628_v19 }
 0x73e   :  { %v633_v24 = vsel %vm632_vm6, %v1333_v16, %v629_v20 }
 0x73f   :  { %v638_v29 = vsel %vm635_vm7, %v637_v28, %v633_v24 }
 0x786   :  { %v659_v30 = vpop.permute.xlu2 %658 }
 0x787   :  { %v661_v31 = vmul.f32 %v659_v30, %v638_v29 }
 0x789   :  { %v1711_v34 = vsel %vm663_vm8, %v661_v31, %v1674_v48  ;;  %v1713_v35 = vsel %vm663_vm8, %v661_v31, 0.0  ;;  %v1723_v48 = vpop.f32.mrf.mxu1 }
 0x78a   :  { %v680_v36 = vpack.c.bf16 %v1711_v34, %v1711_v34 }
 0x78c   :  { %1246 = vmatmul.msk.bf16.vlgmr.msrb.gmra.mxu0 %vm105_vm0, %v680_v36  ;;  %1247 = vmatmul.msk.bf16.vlgmr.msrb.gmra.mxu1 %vm105_vm0, %v680_v36 }
 0x791   :  { %v1727_v49 = vpop.f32.mrf.mxu1 }
 0x797   :  { %v667_v37 = vpop.permute.xlu0 %666 }
 0x798   :  { %v669_v38 = vsel %vm663_vm8, %v667_v37, %v1668_v33  ;;  %v167_v33 = vadd.f32 %v166_v43, %v1581_v51  ;;  %v169_v43 = vadd.f32 %v1723_v48, %v1581_v51 }
 0x799   :  { %752 = vrot.lane.b32.xlu2 %v669_v38, %s1383_s15  ;;  %v1731_v52 = vpop.f32.mrf.mxu1 }
 0x7f3   :  { %v753_v5 = vpop.permute.xlu2 %752 }
 0x809   :  { %v693_v21 = vpop.f32.mrf.mxu0  ;;  %v706_v53 = vpop.f32.mrf.mxu1 }
 0x80a   :  { %v710_v11 = vadd.f32 %v693_v21, %v138_v7  ;;  %v711_v32 = vadd.f32 %v706_v53, %v167_v33  ;;  %v140_v7 = vadd.f32 %v1721_v42, %v1585_v60 }
 0x80c   :  { %1334 = vtanh.f32 %v711_v32  ;;  %v1248_v39 = vmul.f32 -1.442695, %v710_v11  ;;  %v1249_v12 = vmul.f32 -1.442695, %v711_v32 }
 0x80e   :  { %1336 = vpow2.f32 %v1248_v39 }
 0x811   :  { %v695_v26 = vpop.f32.mrf.mxu0  ;;  %v708_v41 = vpop.f32.mrf.mxu1 }
 0x812   :  { %v1335_v54 = vpop.eup %1334 }
 0x813   :  { %757 = vrot.lane.b32.xlu1 %v1335_v54, %s1383_s15 }
 0x814   :  { %v1337_v47 = vpop.eup %1336 }
 0x815   :  { %v718_v55 = vadd.f32 1.0, %v1337_v47 }
 0x817   :  { %1338 = vrcp.f32 %v718_v55  ;;  %v731_v62 = vand.u32 2147483648, %v718_v55  ;;  %vm725_vm11 = vweird.f32 %v718_v55  ;;  %v729_v63 = vand.u32 2147483647, %v718_v55 }
 0x819   :  { %v732_v1 = vor.u32 1.1754944e-38, %v731_v62  ;;  %vm730_vm13 = vcmp.eq.f32.partialorder %v729_v63, 8.507059e+37 }
 0x81d   :  { %v1339_v56 = vpop.eup %1338 }
 0x81e   :  { %v721_v57 = vmul.f32 %v1339_v56, %v718_v55  ;;  %vm726_vm9 = vweird.f32 %v1339_v56 }
 0x81f   :  { %vm727_vm12 = vmor %vm725_vm11, %vm726_vm9 }
 0x820   :  { %v722_v58 = vsub.f32 1.0, %v721_v57 }
 0x822   :  { %v723_v59 = vmul.f32 %v1339_v56, %v722_v58 }
 0x824   :  { %v724_v61 = vadd.f32 %v1339_v56, %v723_v59 }
 0x826   :  { %v728_v0 = vsel %vm727_vm12, %v1339_v56, %v724_v61 }
 0x827   :  { %v733_v3 = vsel %vm730_vm13, %v732_v1, %v728_v0 }
 0x828   :  { %v755_v6 = vmul.f32 %v753_v5, %v733_v3 }
 0x885   :  { %v758_v2 = vpop.permute.xlu1 %757 }
 0x886   :  { %v760_v4 = vmul.f32 %v758_v2, %v733_v3 }
 0x888   :  { %762 = vrot.lane.b32.xlu0 %v760_v4, %s1383_s15 }
 0x8fa   :  { %v763_v8 = vpop.permute.xlu0 %762 }
 0x8fb   :  { %v765_v9 = vadd.f32 %v763_v8, %v755_v6 }
 0x8fd   :  { %1340 = vtanh.f32 %v765_v9  ;;  %776 = vrot.lane.b32.xlu2 %v765_v9, %s1383_s15 }
 0x8fe   :  { %1342 = vpow2.f32 %v1249_v12 }
 0x903   :  { %v1341_v10 = vpop.eup %1340 }
 0x904   :  { %768 = vrot.lane.b32.xlu1 %v1341_v10, %s1383_s15  ;;  %v1343_v14 = vpop.eup %1342 }
 0x905   :  { %v719_v15 = vadd.f32 1.0, %v1343_v14  ;;  %v886_v14 = vld [vmem:[%s1926_s1 + $0x28] sm:$0xff] }
 0x906   :  { %vm887_vm8 = vcmp.gt.f32.partialorder %v886_v14, 0.5  ;;  %v1000_v14 = vld [vmem:[%s1926_s1 + $0x30] sm:$0xff] }
 0x907   :  { %1344 = vrcp.f32 %v719_v15  ;;  %v746_v24 = vand.u32 2147483648, %v719_v15  ;;  %vm740_vm1 = vweird.f32 %v719_v15  ;;  %v744_v25 = vand.u32 2147483647, %v719_v15 }
 0x909   :  { %v747_v29 = vor.u32 1.1754944e-38, %v746_v24  ;;  %vm745_vm3 = vcmp.eq.f32.partialorder %v744_v25, 8.507059e+37 }
 0x90d   :  { %v1345_v18 = vpop.eup %1344 }
 0x90e   :  { %v736_v19 = vmul.f32 %v1345_v18, %v719_v15  ;;  %vm741_vm15 = vweird.f32 %v1345_v18 }
 0x90f   :  { %vm742_vm2 = vmor %vm740_vm1, %vm741_vm15 }
 0x910   :  { %v737_v20 = vsub.f32 1.0, %v736_v19 }
 0x912   :  { %v738_v22 = vmul.f32 %v1345_v18, %v737_v20 }
 0x914   :  { %v739_v23 = vadd.f32 %v1345_v18, %v738_v22 }
 0x916   :  { %v743_v28 = vsel %vm742_vm2, %v1345_v18, %v739_v23 }
 0x917   :  { %v748_v30 = vsel %vm745_vm3, %v747_v29, %v743_v28 }
 0x957   :  { %v777_v16 = vpop.permute.xlu2 %776 }
 0x958   :  { %v1743_v17 = vsel %vm773_vm14, %v777_v16, %v669_v38 }
 0x959   :  { %866 = vrot.lane.b32.xlu1 %v1743_v17, %s1383_s15 }
 0x976   :  { %v769_v31 = vpop.permute.xlu1 %768 }
 0x977   :  { %v771_v36 = vmul.f32 %v769_v31, %v748_v30 }
 0x979   :  { %v1749_v37 = vsel %vm773_vm14, %v771_v36, %v1711_v34  ;;  %v1752_v38 = vsel %vm773_vm14, %v771_v36, 0.0  ;;  %v172_v36 = vadd.f32 %v1727_v49, %v1581_v51 }
 0x97a   :  { %v794_v40 = vpack.c.bf16 %v1749_v37, %v1749_v37 }
 0x97c   :  { %1250 = vmatmul.msk.bf16.vlgmr.msra.gmra.mxu2 %vm105_vm0, %v794_v40  ;;  %1251 = vmatmul.msk.bf16.vlgmr.msra.gmra.mxu3 %vm105_vm0, %v794_v40  ;;  %v143_v40 = vadd.f32 %v1725_v45, %v1585_v60 }
 0x9cb   :  { %v867_v1 = vpop.permute.xlu1 %866 }
 0x9ff   :  { %v807_v33 = vpop.f32.mrf.mxu2  ;;  %v820_v21 = vpop.f32.mrf.mxu3 }
 0xa00   :  { %v824_v34 = vadd.f32 %v807_v33, %v140_v7  ;;  %v825_v53 = vadd.f32 %v820_v21, %v169_v43 }
 0xa02   :  { %1346 = vtanh.f32 %v825_v53  ;;  %v1252_v41 = vmul.f32 -1.442695, %v824_v34  ;;  %v1253_v6 = vmul.f32 -1.442695, %v825_v53 }
 0xa04   :  { %1348 = vpow2.f32 %v1252_v41 }
 0xa07   :  { %v809_v11 = vpop.f32.mrf.mxu2  ;;  %v822_v32 = vpop.f32.mrf.mxu3 }
 0xa08   :  { %v1347_v26 = vpop.eup %1346 }
 0xa09   :  { %871 = vrot.lane.b32.xlu0 %v1347_v26, %s1383_s15 }
 0xa0a   :  { %v1349_v54 = vpop.eup %1348 }
 0xa0b   :  { %v832_v39 = vadd.f32 1.0, %v1349_v54 }
 0xa0d   :  { %1350 = vrcp.f32 %v832_v39  ;;  %v845_v57 = vand.u32 2147483648, %v832_v39  ;;  %vm839_vm5 = vweird.f32 %v832_v39  ;;  %v843_v58 = vand.u32 2147483647, %v832_v39 }
 0xa0f   :  { %v846_v61 = vor.u32 1.1754944e-38, %v845_v57  ;;  %vm844_vm7 = vcmp.eq.f32.partialorder %v843_v58, 8.507059e+37 }
 0xa13   :  { %v1351_v47 = vpop.eup %1350 }
 0xa14   :  { %v835_v48 = vmul.f32 %v1351_v47, %v832_v39  ;;  %vm840_vm4 = vweird.f32 %v1351_v47 }
 0xa15   :  { %vm841_vm6 = vmor %vm839_vm5, %vm840_vm4 }
 0xa16   :  { %v836_v55 = vsub.f32 1.0, %v835_v48 }
 0xa18   :  { %v837_v56 = vmul.f32 %v1351_v47, %v836_v55 }
 0xa1a   :  { %v838_v42 = vadd.f32 %v1351_v47, %v837_v56 }
 0xa1c   :  { %v842_v59 = vsel %vm841_vm6, %v1351_v47, %v838_v42 }
 0xa1d   :  { %v847_v63 = vsel %vm844_vm7, %v846_v61, %v842_v59  ;;  %vm1001_vm7 = vcmp.gt.f32.partialorder %v1000_v14, 0.5 }
 0xa1e   :  { %v869_v2 = vmul.f32 %v867_v1, %v847_v63 }
 0xa7b   :  { %v872_v62 = vpop.permute.xlu0 %871 }
 0xa7c   :  { %v874_v0 = vmul.f32 %v872_v62, %v847_v63 }
 0xa7e   :  { %876 = vrot.lane.b32.xlu2 %v874_v0, %s1383_s15 }
 0xad8   :  { %v877_v3 = vpop.permute.xlu2 %876 }
 0xad9   :  { %v879_v4 = vadd.f32 %v877_v3, %v869_v2 }
 0xadb   :  { %1352 = vtanh.f32 %v879_v4  ;;  %890 = vrot.lane.b32.xlu1 %v879_v4, %s1383_s15 }
 0xadc   :  { %1354 = vpow2.f32 %v1253_v6 }
 0xae1   :  { %v1353_v5 = vpop.eup %1352 }
 0xae2   :  { %882 = vrot.lane.b32.xlu0 %v1353_v5, %s1383_s15  ;;  %v1355_v8 = vpop.eup %1354 }
 0xae3   :  { %v833_v9 = vadd.f32 1.0, %v1355_v8 }
 0xae5   :  { %1356 = vrcp.f32 %v833_v9  ;;  %v860_v20 = vand.u32 2147483648, %v833_v9  ;;  %vm854_vm11 = vweird.f32 %v833_v9  ;;  %v858_v22 = vand.u32 2147483647, %v833_v9 }
 0xae7   :  { %v861_v24 = vor.u32 1.1754944e-38, %v860_v20  ;;  %vm859_vm13 = vcmp.eq.f32.partialorder %v858_v22, 8.507059e+37 }
 0xaeb   :  { %v1357_v10 = vpop.eup %1356 }
 0xaec   :  { %v850_v12 = vmul.f32 %v1357_v10, %v833_v9  ;;  %vm855_vm9 = vweird.f32 %v1357_v10 }
 0xaed   :  { %vm856_vm12 = vmor %vm854_vm11, %vm855_vm9 }
 0xaee   :  { %v851_v13 = vsub.f32 1.0, %v850_v12 }
 0xaf0   :  { %v852_v15 = vmul.f32 %v1357_v10, %v851_v13 }
 0xaf2   :  { %v853_v18 = vadd.f32 %v1357_v10, %v852_v15 }
 0xaf4   :  { %v857_v23 = vsel %vm856_vm12, %v1357_v10, %v853_v18 }
 0xaf5   :  { %v862_v25 = vsel %vm859_vm13, %v861_v24, %v857_v23  ;;  %vm454_vm13 = vcmask 523520  }
 0xb4d   :  { %v891_v16 = vpop.permute.xlu1 %890 }
 0xb4e   :  { %v1771_v19 = vsel %vm887_vm8, %v891_v16, %v1743_v17 }
 0xb4f   :  { %980 = vrot.lane.b32.xlu0 %v1771_v19, %s1383_s15 }
 0xb54   :  { %v883_v28 = vpop.permute.xlu0 %882 }
 0xb55   :  { %v885_v29 = vmul.f32 %v883_v28, %v862_v25  ;;  %v671_v28 = vmul.f32 0.5, %v1713_v35  ;;  %v145_v35 = vadd.f32 %v1729_v50, %v1585_v60 }
 0xb57   :  { %v1777_v30 = vsel %vm887_vm8, %v885_v29, %v1749_v37  ;;  %v1780_v17 = vsel %vm887_vm8, %v885_v29, 0.0 }
 0xb58   :  { %v908_v31 = vpack.c.bf16 %v1777_v30, %v1777_v30 }
 0xb5a   :  { %1254 = vmatmul.msk.bf16.vlgmr.msra.gmra.mxu0 %vm105_vm0, %v908_v31  ;;  %1255 = vmatmul.msk.bf16.vlgmr.msra.gmra.mxu1 %vm105_vm0, %v908_v31 }
 0xbc1   :  { %v981_v59 = vpop.permute.xlu0 %980 }
 0xbd7   :  { %v921_v43 = vpop.f32.mrf.mxu0  ;;  %v934_v7 = vpop.f32.mrf.mxu1 }
 0xbd8   :  { %v938_v37 = vadd.f32 %v921_v43, %v143_v40  ;;  %v939_v33 = vadd.f32 %v934_v7, %v172_v36 }
 0xbda   :  { %1358 = vtanh.f32 %v939_v33  ;;  %v1256_v11 = vmul.f32 -1.442695, %v938_v37  ;;  %v1257_v1 = vmul.f32 -1.442695, %v939_v33 }
 0xbdc   :  { %1360 = vpow2.f32 %v1256_v11 }
 0xbdf   :  { %v923_v21 = vpop.f32.mrf.mxu0  ;;  %v936_v34 = vpop.f32.mrf.mxu1 }
 0xbe0   :  { %v1359_v53 = vpop.eup %1358 }
 0xbe1   :  { %985 = vrot.lane.b32.xlu2 %v1359_v53, %s1383_s15 }
 0xbe2   :  { %v1361_v32 = vpop.eup %1360 }
 0xbe3   :  { %v946_v26 = vadd.f32 1.0, %v1361_v32 }
 0xbe5   :  { %1362 = vrcp.f32 %v946_v26  ;;  %v959_v47 = vand.u32 2147483648, %v946_v26  ;;  %vm953_vm15 = vweird.f32 %v946_v26  ;;  %v957_v48 = vand.u32 2147483647, %v946_v26 }
 0xbe7   :  { %v960_v56 = vor.u32 1.1754944e-38, %v959_v47  ;;  %vm958_vm2 = vcmp.eq.f32.partialorder %v957_v48, 8.507059e+37  ;;  %v449_v48 = vmul.f32 0.5, %v1643_v46 }
 0xbeb   :  { %v1363_v41 = vpop.eup %1362 }
 0xbec   :  { %v949_v49 = vmul.f32 %v1363_v41, %v946_v26  ;;  %vm954_vm14 = vweird.f32 %v1363_v41 }
 0xbed   :  { %vm955_vm1 = vmor %vm953_vm15, %vm954_vm14  ;;  %vm456_vm14 = vcmask 785920  }
 0xbee   :  { %v950_v54 = vsub.f32 1.0, %v949_v49 }
 0xbf0   :  { %v951_v39 = vmul.f32 %v1363_v41, %v950_v54 }
 0xbf2   :  { %v952_v45 = vadd.f32 %v1363_v41, %v951_v39 }
 0xbf4   :  { %v956_v55 = vsel %vm955_vm1, %v1363_v41, %v952_v45 }
 0xbf5   :  { %v961_v57 = vsel %vm958_vm2, %v960_v56, %v956_v55  ;;  %v781_v55 = vmul.f32 0.5, %v1752_v38 }
 0xbf6   :  { %v983_v61 = vmul.f32 %v981_v59, %v961_v57 }
 0xc3b   :  { %v986_v42 = vpop.permute.xlu2 %985 }
 0xc3c   :  { %v988_v58 = vmul.f32 %v986_v42, %v961_v57 }
 0xc3e   :  { %990 = vrot.lane.b32.xlu1 %v988_v58, %s1383_s15 }
 0xcb0   :  { %v991_v62 = vpop.permute.xlu1 %990 }
 0xcb1   :  { %v993_v63 = vadd.f32 %v991_v62, %v983_v61  ;;  %v561_v61 = vmul.f32 0.5, %v1677_v27  ;;  %v895_v62 = vmul.f32 0.5, %v1780_v17  ;;  %v1114_v17 = vld [vmem:[%s1926_s1 + $0x38] sm:$0xff] }
 0xcb3   :  { %1364 = vtanh.f32 %v993_v63  ;;  %1004 = vrot.lane.b32.xlu0 %v993_v63, %s1383_s15 }
 0xcb4   :  { %1366 = vpow2.f32 %v1257_v1 }
 0xcb9   :  { %v1365_v0 = vpop.eup %1364 }
 0xcba   :  { %996 = vrot.lane.b32.xlu2 %v1365_v0, %s1383_s15  ;;  %v1367_v2 = vpop.eup %1366 }
 0xcbb   :  { %v947_v3 = vadd.f32 1.0, %v1367_v2 }
 0xcbd   :  { %1368 = vrcp.f32 %v947_v3  ;;  %v974_v10 = vand.u32 2147483648, %v947_v3  ;;  %vm968_vm4 = vweird.f32 %v947_v3  ;;  %v972_v12 = vand.u32 2147483647, %v947_v3 }
 0xcbf   :  { %v975_v15 = vor.u32 1.1754944e-38, %v974_v10  ;;  %vm973_vm6 = vcmp.eq.f32.partialorder %v972_v12, 8.507059e+37 }
 0xcc3   :  { %v1369_v4 = vpop.eup %1368 }
 0xcc4   :  { %v964_v5 = vmul.f32 %v1369_v4, %v947_v3  ;;  %vm969_vm3 = vweird.f32 %v1369_v4 }
 0xcc5   :  { %vm970_vm5 = vmor %vm968_vm4, %vm969_vm3  ;;  %vm1115_vm4 = vcmp.gt.f32.partialorder %v1114_v17, 0.5 }
 0xcc6   :  { %v965_v6 = vsub.f32 1.0, %v964_v5 }
 0xcc8   :  { %v966_v8 = vmul.f32 %v1369_v4, %v965_v6 }
 0xcca   :  { %v967_v9 = vadd.f32 %v1369_v4, %v966_v8 }
 0xccc   :  { %v971_v13 = vsel %vm970_vm5, %v1369_v4, %v967_v9 }
 0xccd   :  { %v976_v16 = vsel %vm973_vm6, %v975_v15, %v971_v13 }
 0xd14   :  { %v997_v18 = vpop.permute.xlu2 %996 }
 0xd15   :  { %v999_v20 = vmul.f32 %v997_v18, %v976_v16 }
 0xd17   :  { %v1798_v22 = vsel %vm1001_vm7, %v999_v20, %v1777_v30  ;;  %v1008_v29 = vsel %vm1001_vm7, %v999_v20, 0.0 }
 0xd18   :  { %v1022_v23 = vpack.c.bf16 %v1798_v22, %v1798_v22  ;;  %v1810_v30 = vmul.f32 0.5, %v1008_v29 }
 0xd1a   :  { %1258 = vmatmul.msk.bf16.vlgmr.msrb.gmra.mxu2 %vm105_vm0, %v1022_v23  ;;  %1259 = vmatmul.msk.bf16.vlgmr.msrb.gmra.mxu3 %vm105_vm0, %v1022_v23  ;;  %vm344_vm0 = vcmask 1048320  }
 0xd25   :  { %v1005_v24 = vpop.permute.xlu0 %1004 }
 0xd26   :  { %v1007_v25 = vsel %vm1001_vm7, %v1005_v24, %v1771_v19 }
 0xd27   :  { %1094 = vrot.lane.b32.xlu2 %v1007_v25, %s1383_s15 }
 0xd2f   :  { %341 = vrot.lane.b32.xlu2 %v1600_v44, %s1383_s15  ;;  %v174_v44 = vadd.f32 %v1731_v52, %v1581_v51 }
 0xd37   :  { %673 = vrot.lane.b32.xlu2 %v671_v28, %s1384_s12 }
 0xd3f   :  { %1012 = vrot.lane.b32.xlu2 %v1810_v30, %s1383_s15 }
 0xd81   :  { %v1095_v31 = vpop.permute.xlu2 %1094 }
 0xd89   :  { %v342_v36 = vpop.permute.xlu2 %341 }
 0xd8a   :  { %345 = vst.msk [vmem:[%s1927_s5 + $0x8] sm:$0xff] %vm344_vm0, %v342_v36 }
 0xd91   :  { %v674_v46 = vpop.permute.xlu2 %673 }
 0xd99   :  { %v1013_v36 = vpop.permute.xlu2 %1012 }
 0xd9d   :  { %v1035_v19 = vpop.f32.mrf.mxu2  ;;  %v1048_v40 = vpop.f32.mrf.mxu3 }
 0xd9e   :  { %v1052_v43 = vadd.f32 %v1035_v19, %v145_v35  ;;  %v1053_v7 = vadd.f32 %v1048_v40, %v174_v44 }
 0xda0   :  { %1370 = vtanh.f32 %v1053_v7  ;;  %v1260_v34 = vmul.f32 -1.442695, %v1052_v43  ;;  %v1261_v63 = vmul.f32 -1.442695, %v1053_v7 }
 0xda2   :  { %1372 = vpow2.f32 %v1260_v34 }
 0xda5   :  { %v1037_v37 = vpop.f32.mrf.mxu2  ;;  %v1050_v33 = vpop.f32.mrf.mxu3 }
 0xda6   :  { %v1371_v21 = vpop.eup %1370 }
 0xda7   :  { %1099 = vrot.lane.b32.xlu1 %v1371_v21, %s1383_s15 }
 0xda8   :  { %v1373_v53 = vpop.eup %1372 }
 0xda9   :  { %v1060_v11 = vadd.f32 1.0, %v1373_v53 }
 0xdab   :  { %1374 = vrcp.f32 %v1060_v11  ;;  %v1073_v50 = vand.u32 2147483648, %v1060_v11  ;;  %vm1067_vm9 = vweird.f32 %v1060_v11  ;;  %v1071_v41 = vand.u32 2147483647, %v1060_v11 }
 0xdad   :  { %v1074_v54 = vor.u32 1.1754944e-38, %v1073_v50  ;;  %vm1072_vm12 = vcmp.eq.f32.partialorder %v1071_v41, 8.507059e+37 }
 0xdb1   :  { %v1375_v32 = vpop.eup %1374 }
 0xdb2   :  { %v1063_v51 = vmul.f32 %v1375_v32, %v1060_v11  ;;  %vm1068_vm8 = vweird.f32 %v1375_v32 }
 0xdb3   :  { %vm1069_vm11 = vmor %vm1067_vm9, %vm1068_vm8 }
 0xdb4   :  { %v1064_v52 = vsub.f32 1.0, %v1063_v51 }
 0xdb6   :  { %v1065_v26 = vmul.f32 %v1375_v32, %v1064_v52 }
 0xdb8   :  { %v1066_v60 = vadd.f32 %v1375_v32, %v1065_v26 }
 0xdba   :  { %v1070_v49 = vsel %vm1069_vm11, %v1375_v32, %v1066_v60 }
 0xdbb   :  { %v1075_v45 = vsel %vm1072_vm12, %v1074_v54, %v1070_v49 }
 0xdbc   :  { %v1097_v56 = vmul.f32 %v1095_v31, %v1075_v45 }
 0xe19   :  { %v1100_v39 = vpop.permute.xlu1 %1099 }
 0xe1a   :  { %v1102_v47 = vmul.f32 %v1100_v39, %v1075_v45 }
 0xe1c   :  { %1104 = vrot.lane.b32.xlu0 %v1102_v47, %s1383_s15 }
 0xe24   :  { %451 = vrot.lane.b32.xlu0 %v449_v48, %s1385_s2 }
 0xe2c   :  { %787 = vrot.lane.b32.xlu0 %v781_v55, %s1383_s15 }
 0xe8e   :  { %v1105_v42 = vpop.permute.xlu0 %1104 }
 0xe8f   :  { %v1107_v57 = vadd.f32 %v1105_v42, %v1097_v56 }
 0xe91   :  { %1376 = vtanh.f32 %v1107_v57 }
 0xe92   :  { %1378 = vpow2.f32 %v1261_v63 }
 0xe96   :  { %v452_v58 = vpop.permute.xlu0 %451 }
 0xe97   :  { %v1377_v59 = vpop.eup %1376  ;;  %455 = vst.msk [vmem:[%s1927_s5] sm:$0xff] %vm454_vm13, %v452_v58 }
 0xe98   :  { %457 = vst.msk [vmem:[%s1927_s5 + $0x8] sm:$0xff] %vm456_vm14, %v452_v58  ;;  %1110 = vrot.lane.b32.xlu1 %v1377_v59, %s1383_s15  ;;  %v1379_v0 = vpop.eup %1378 }
 0xe99   :  { %567 = vst.msk [vmem:[%s1927_s5 + $0x8] sm:$0xff] %vm454_vm13, %v561_v61  ;;  %v1061_v1 = vadd.f32 1.0, %v1379_v0 }
 0xe9a   :  { %677 = vst.msk [vmem:[%s1927_s5 + $0x8] sm:$0xff] %vm338_vm10, %v674_v46 }
 0xe9b   :  { %1380 = vrcp.f32 %v1061_v1  ;;  %v1088_v8 = vand.u32 2147483648, %v1061_v1  ;;  %vm1082_vm1 = vweird.f32 %v1061_v1  ;;  %v1086_v9 = vand.u32 2147483647, %v1061_v1 }
 0xe9d   :  { %v1089_v12 = vor.u32 1.1754944e-38, %v1088_v8  ;;  %vm1087_vm3 = vcmp.eq.f32.partialorder %v1086_v9, 8.507059e+37 }
 0xe9e   :  { %v788_v25 = vpop.permute.xlu0 %787 }
 0xea0   :  { %563 = vrot.lane.b32.xlu1 %v561_v61, %s1383_s15 }
 0xea1   :  { %v782_v27 = vld [vmem:[%s1927_s5 + $0x8] sm:$0xff]  ;;  %v1381_v2 = vpop.eup %1380 }
 0xea2   :  { %v783_v38 = vadd.f32 %v782_v27, %v781_v55  ;;  %v1078_v3 = vmul.f32 %v1381_v2, %v1061_v1  ;;  %vm1083_vm15 = vweird.f32 %v1381_v2 }
 0xea3   :  { %vm1084_vm2 = vmor %vm1082_vm1, %vm1083_vm15 }
 0xea4   :  { %784 = vst.msk [vmem:[%s1927_s5 + $0x8] sm:$0xff] %vm338_vm10, %v783_v38  ;;  %v1079_v4 = vsub.f32 1.0, %v1078_v3 }
 0xea6   :  { %v1080_v5 = vmul.f32 %v1381_v2, %v1079_v4 }
 0xea8   :  { %898 = vrot.lane.b32.xlu1 %v895_v62, %s1385_s2  ;;  %v1081_v6 = vadd.f32 %v1381_v2, %v1080_v5 }
 0xeaa   :  { %v1085_v10 = vsel %vm1084_vm2, %v1381_v2, %v1081_v6 }
 0xeab   :  { %v1090_v13 = vsel %vm1087_vm3, %v1089_v12, %v1085_v10 }
 0xf0a   :  { %v1111_v14 = vpop.permute.xlu1 %1110 }
 0xf0b   :  { %v1113_v15 = vmul.f32 %v1111_v14, %v1090_v13 }
 0xf0d   :  { %v1117_v16 = vsel %vm1115_vm4, %v1113_v15, 0.0  ;;  %v1116_v18 = vsel %vm1115_vm4, %v1113_v15, %v1798_v22  ;;  %v896_v22 = vld [vmem:[%s1927_s5 + $0x8] sm:$0xff] }
 0xf0e   :  { %v1118_v20 = vmul.f32 0.5, %v1117_v16  ;;  %1130 = vrot.lane.b32.xlu0 %v1116_v18, %s1384_s12 }
 0xf10   :  { %1121 = vrot.lane.b32.xlu1 %v1118_v20, %s1384_s12 }
 0xf12   :  { %v564_v23 = vpop.permute.xlu1 %563 }
 0xf13   :  { %566 = vst.msk [vmem:[%s1927_s5] sm:$0xff] %vm456_vm14, %v564_v23 }
 0xf14   :  { %676 = vst.msk [vmem:[%s1927_s5] sm:$0xff] %vm344_vm0, %v674_v46 }
 0xf1a   :  { %v899_v24 = vpop.permute.xlu1 %898 }
 0xf1b   :  { %v785_v28 = vld [vmem:[%s1927_s5] sm:$0xff]  ;;  %v901_v29 = vadd.f32 %v899_v24, %v896_v22 }
 0xf1c   :  { %v790_v31 = vadd.f32 %v788_v25, %v785_v28 }
 0xf1d   :  { %902 = vst.msk [vmem:[%s1927_s5 + $0x8] sm:$0xff] %vm454_vm13, %v901_v29 }
 0xf1e   :  { %791 = vst.msk [vmem:[%s1927_s5] sm:$0xff] %vm344_vm0, %v790_v31 }
 0xf24   :  { %v1010_v44 = vld [vmem:[%s1927_s5 + $0x8] sm:$0xff] }
 0xf25   :  { %v903_v35 = vld [vmem:[%s1927_s5] sm:$0xff]  ;;  %v1015_v19 = vadd.f32 %v1013_v36, %v1010_v44 }
 0xf26   :  { %v904_v40 = vadd.f32 %v903_v35, %v899_v24 }
 0xf27   :  { %1016 = vst.msk [vmem:[%s1927_s5 + $0x8] sm:$0xff] %vm456_vm14, %v1015_v19 }
 0xf28   :  { %905 = vst.msk [vmem:[%s1927_s5] sm:$0xff] %vm456_vm14, %v904_v40 }
 0xf2e   :  { %v1119_v34 = vld [vmem:[%s1927_s5 + $0x8] sm:$0xff] }
 0xf2f   :  { %v1017_v43 = vld [vmem:[%s1927_s5] sm:$0xff] }
 0xf30   :  { %v1018_v7 = vadd.f32 %v1017_v43, %v1810_v30 }
 0xf32   :  { %1019 = vst.msk [vmem:[%s1927_s5] sm:$0xff] %vm454_vm13, %v1018_v7 }
 0xf39   :  { %v1126_v53 = vld [vmem:[%s1927_s5] sm:$0xff] }
 0xf80   :  { %v1131_v37 = vpop.permute.xlu0 %1130 }
 0xf81   :  { %v1133_v33 = vadd.f32 %v1131_v37, %v1116_v18 }
 0xf82   :  { %v1122_v21 = vpop.permute.xlu1 %1121 }
 0xf83   :  { %v1134_v11 = vmul.f32 0.5, %v1133_v33  ;;  %v1124_v32 = vadd.f32 %v1122_v21, %v1119_v34  ;;  %v1127_v51 = vadd.f32 %v1126_v53, %v1122_v21 }
 0xf85   :  { %1135 = vst.msk [vmem:[%s1928_s6] sm:$0xff] %vm338_vm10, %v1134_v11 }
 0xf86   :  { %1125 = vst.msk [vmem:[%s1927_s5 + $0x8] sm:$0xff] %vm344_vm0, %v1124_v32 }
 0xf87   :  { %1128 = vst.msk [vmem:[%s1927_s5] sm:$0xff] %vm338_vm10, %v1127_v51 }

</bundles_post_ra>
